<compile_context>
chip_gen: v7x
topology: tpu7x:2x2x1
jax: 0.10.0
libtpu: 0.0.40
codegen_flags: <defaults>
</compile_context>

<pallas_src>
import numpy as np

import jax
import jax.numpy as jnp
from jax import lax
from jax.experimental import pallas as pl
from jax.experimental.pallas import tpu as pltpu


def _round_up(v, m):
    return (v + m - 1) // m * m


def _pick_batch_tile(n, hp, ho2, p, target_rows=256):
    """Largest divisor of n whose stacked slab stays under target_rows and keeps the
    x/out BlockSpec sublane dims either 8-divisible or full-extent.
    (On v7x, prefer leaving >= 4 grid steps when n is large; irrelevant at toy size.)"""
    best = None
    for d in range(1, n + 1):
        if n % d:
            continue
        rows_ok = (d == n) or ((d * hp) % 8 == 0 and (d * ho2) % 8 == 0)
        if not rows_ok:
            continue
        if d * (hp + p) + p <= target_rows or best is None:
            best = d
    return best if best is not None else n


# --------------------------- weight packing (glue) ---------------------------
# Weight-sized work only; in a real model this is precomputed once per update.

def _conv_lane_weights(w_oihw, pad, n_src_cols, n_dst_cols, src_lanes, dst_lanes, dtype):
    """Pack OIHW stride-1 conv weights as ONE block-Toeplitz lane matmul.

    Returns t of shape (KH*src_lanes, dst_lanes) with
        t[kh*src_lanes + jj*Ci + c, j*Co + d] = w[d, c, kh, kw]  for jj = j + kw - pad
    (zero elsewhere).  A matmul of concat_kh(row-slab shifted by kh rows) against t
    performs the full (kh, kw, ci) contraction; W-padding is handled by omission.
    """
    co, ci, KH, KW = w_oihw.shape
    sel = np.zeros((KW, n_src_cols, n_dst_cols), np.float32)
    for kw in range(KW):
        for j in range(n_dst_cols):
            jj = j + kw - pad
            if 0 <= jj < n_src_cols:
                sel[kw, jj, j] = 1.0
    wk = jnp.transpose(w_oihw, (2, 3, 1, 0)).astype(jnp.float32)     # (KH, KW, Ci, Co)
    t = jnp.einsum("xgj,hxcd->hgcjd", jnp.asarray(sel), wk)          # (KH, G, Ci, Wd, Co)
    t = t.reshape(KH, n_src_cols * ci, n_dst_cols * co)
    t = jnp.pad(t, ((0, 0), (0, src_lanes - n_src_cols * ci),
                    (0, dst_lanes - n_dst_cols * co)))
    return t.reshape(KH * src_lanes, dst_lanes).astype(dtype)


# ------------------------------- fused forward --------------------------------

def down_conv_forward(x_nchw, params, kernel_size, padding, stride,
                      compute_dtype=jnp.bfloat16, batch_tile=None):
    # Reproduce the positional-arg swap in nn.Conv2d (see NOTE at top).
    conv_stride = int(padding)
    conv_pad = int(stride)
    if conv_stride != 1:
        # TODO(synk): fused Pallas path only implements conv stride == 1 (the module's
        # positional swap makes the effective stride = `padding` = 1 for this spec).
        raise NotImplementedError("fused DownConv kernel assumes conv stride == 1")

    N, C, H, W = x_nchw.shape
    K = int(kernel_size)
    p = conv_pad
    Co = params["w1"].shape[0]
    f32 = jnp.float32
    exact = jnp.dtype(compute_dtype) == jnp.dtype(jnp.float32)
    prec = lax.Precision.HIGHEST if exact else None

    Hp, Wp = H // 2, W // 2                      # MaxPool2d(2), floor mode
    H2, W2 = 2 * Hp, 2 * Wp
    Ho1 = Hp + 2 * p - K + 1
    Wo1 = Wp + 2 * p - K + 1
    Ho2 = Ho1 + 2 * p - K + 1
    Wo2 = Wo1 + 2 * p - K + 1
    assert min(Ho1, Wo1, Ho2, Wo2) > 0

    WpC = Wp * C                                 # compact pooled row width
    SP1 = _round_up(WpC, 128)                    # conv1 per-kh contraction lanes
    L1 = _round_up(Wo1 * Co, 128)                # conv1 output lanes (lane-dense)
    L2 = _round_up(Wo2 * Co, 128)                # conv2 output lanes (lane-dense)
    # TODO(synk): for large W*C add a lane-tile grid axis over L1/L2 (512-1024 lane
    # tiles, index-map t1/t2 by it) and raise vmem_limit_bytes -- the block-Toeplitz
    # weights grow O(K * W*Ci * W*Co) and v7x only has 64 MiB VMEM.

    B = batch_tile or _pick_batch_tile(N, Hp, Ho2, p)
    assert N % B == 0
    S1 = Hp + p                                  # image stride in pbuf1 (shared halos)
    S2 = Ho1 + p                                 # image stride in pbuf2
    R1 = B * S1 + p                              # pbuf1 rows
    R2 = B * S2 + p                              # pbuf2 rows
    R1o = R1 - K + 1                             # conv1 stacked-output rows
    R2o = R2 - K + 1                             # conv2 stacked-output rows

    # ---- wrapper-side layout (one fused XLA copy): NCHW -> four pooling-tap lane
    # slabs [r2i,c2j | r2i,c2j+1 | r2i+1,c2j | r2i+1,c2j+1], each Wp*C lanes wide.
    # TODO(synk): if the surrounding model kept NHWC activations, this pass and the
    # NCHW epilogue below would disappear; kept to match the PyTorch interface.
    xh = jnp.transpose(x_nchw, (0, 2, 3, 1)).astype(f32)[:, :H2, :W2, :]
    x6 = xh.reshape(N, Hp, 2, Wp, 2, C)
    taps = [x6[:, :, r, :, c, :].reshape(N * Hp, WpC) for r in (0, 1) for c in (0, 1)]
    x2d = jnp.concatenate(taps, axis=-1)         # (N*Hp, 4*WpC)

    # Block-Toeplitz lane weights (K row-shifts pre-folded) + padded bias rows.
    t1 = _conv_lane_weights(params["w1"], p, Wp, Wo1, SP1, L1, compute_dtype)
    t2 = _conv_lane_weights(params["w2"], p, Wo1, Wo2, L1, L2, compute_dtype)
    b1row = jnp.pad(jnp.tile(params["b1"], Wo1), (0, L1 - Wo1 * Co)).reshape(1, L1).astype(f32)
    b2row = jnp.pad(jnp.tile(params["b2"], Wo2), (0, L2 - Wo2 * Co)).reshape(1, L2).astype(f32)

    def kernel(x_ref, t1_ref, b1_ref, t2_ref, b2_ref, o_ref, pbuf1, pbuf2):
        cdt = pbuf1.dtype

        # ---- MaxPool2d(2): 4-way elementwise max over the tap slabs (f32, VPU) -----
        xr = x_ref[...]                                            # (B*Hp, 4*WpC)
        pooled = jnp.maximum(jnp.maximum(xr[:, 0 * WpC:1 * WpC], xr[:, 1 * WpC:2 * WpC]),
                             jnp.maximum(xr[:, 2 * WpC:3 * WpC], xr[:, 3 * WpC:4 * WpC]))
        if SP1 > WpC:                                              # lane-pad in-register
            pooled = jnp.concatenate(
                [pooled, jnp.zeros((B * Hp, SP1 - WpC), pooled.dtype)], axis=-1)
        pooled = pooled.astype(cdt)                                # single cast to MXU dtype

        # ---- stack pooled slabs in pbuf1; zero only the (B+1)*p halo rows ----------
        zrow1 = jnp.zeros((p, SP1), cdt)
        for b in range(B + 1):
            pbuf1[b * S1:b * S1 + p, :] = zrow1
        for b in range(B):
            pbuf1[b * S1 + p:b * S1 + p + Hp, :] = pooled[b * Hp:(b + 1) * Hp, :]

        # ---- conv1 + bias + ReLU: ONE MXU matmul (K row-shifts folded on lanes) ----
        lhs1 = jnp.concatenate([pbuf1[kh:kh + R1o, :] for kh in range(K)], axis=-1)
        acc1 = jnp.dot(lhs1, t1_ref[...], preferred_element_type=f32, precision=prec)
        h1 = jnp.maximum(acc1 + b1_ref[...], 0.0).astype(cdt)      # padded lanes stay 0

        # ---- restack valid conv1 rows in pbuf2 (halo rows zeroed) ------------------
        zrow2 = jnp.zeros((p, L1), cdt)
        for b in range(B + 1):
            pbuf2[b * S2:b * S2 + p, :] = zrow2
        for b in range(B):
            pbuf2[b * S2 + p:b * S2 + p + Ho1, :] = h1[b * S1:b * S1 + Ho1, :]

        # ---- conv2 + bias + ReLU: ONE MXU matmul ------------------------------------
        lhs2 = jnp.concatenate([pbuf2[kh:kh + R2o, :] for kh in range(K)], axis=-1)
        acc2 = jnp.dot(lhs2, t2_ref[...], preferred_element_type=f32, precision=prec)
        h2 = jnp.maximum(acc2 + b2_ref[...], 0.0)

        # ---- compact the valid rows into the lane-dense output block ---------------
        for b in range(B):
            o_ref[b * Ho2:(b + 1) * Ho2, :] = h2[b * S2:b * S2 + Ho2, :].astype(o_ref.dtype)

    def build(single_buffer_weights):
        wmode = {"pipeline_mode": pl.Buffered(1)} if single_buffer_weights else {}
        in_specs = [
            pl.BlockSpec((B * Hp, 4 * WpC), lambda n: (n, 0)),
            pl.BlockSpec((K * SP1, L1), lambda n: (0, 0), **wmode),
            pl.BlockSpec((1, L1), lambda n: (0, 0), **wmode),
            pl.BlockSpec((K * L1, L2), lambda n: (0, 0), **wmode),
            pl.BlockSpec((1, L2), lambda n: (0, 0), **wmode),
        ]
        return pl.pallas_call(
            kernel,
            out_shape=jax.ShapeDtypeStruct((N * Ho2, L2), f32),
            grid=(N // B,),
            in_specs=in_specs,
            out_specs=pl.BlockSpec((B * Ho2, L2), lambda n: (n, 0)),
            scratch_shapes=[pltpu.VMEM((R1, SP1), compute_dtype),   # stacked pooled slabs
                            pltpu.VMEM((R2, L1), compute_dtype)],   # stacked conv1 slabs
            compiler_params=pltpu.CompilerParams(
                dimension_semantics=("parallel",)),
        )

    # Grid-constant weights/biases: single-buffer them (halves weight VMEM residency,
    # v7x-relevant).  Fall back silently if this Pallas build rejects pipeline_mode.
    try:
        out2d = build(True)(x2d, t1, b1row, t2, b2row)
    except Exception:
        out2d = build(False)(x2d, t1, b1row, t2, b2row)

    out = out2d[:, :Wo2 * Co].reshape(N, Ho2, Wo2, Co)
    return jnp.transpose(out, (0, 3, 1, 2))      # NHWC -> NCHW (module interface)


# --------------------------- params / reference check ------------------------

def init_params(key, in_channels, out_channels, kernel_size):
    k1, k2, k3, k4 = jax.random.split(key, 4)
    fan1 = in_channels * kernel_size * kernel_size
    fan2 = out_channels * kernel_size * kernel_size
    b1 = 1.0 / float(jnp.sqrt(fan1))
    b2 = 1.0 / float(jnp.sqrt(fan2))
    return dict(
        w1=jax.random.uniform(k1, (out_channels, in_channels, kernel_size, kernel_size),
                              jnp.float32, -b1, b1),
        b1=jax.random.uniform(k2, (out_channels,), jnp.float32, -b1, b1),
        w2=jax.random.uniform(k3, (out_channels, out_channels, kernel_size, kernel_size),
                              jnp.float32, -b2, b2),
        b2=jax.random.uniform(k4, (out_channels,), jnp.float32, -b2, b2),
    )


def _reference(x_nchw, params, conv_stride, conv_pad):
    x = jnp.transpose(x_nchw, (0, 2, 3, 1))
    x = lax.reduce_window(x, -jnp.inf, lax.max, (1, 2, 2, 1), (1, 2, 2, 1), "VALID")
    dn = ("NHWC", "OIHW", "NHWC")
    x = lax.conv_general_dilated(x, params["w1"], (conv_stride,) * 2,
                                 [(conv_pad, conv_pad)] * 2, dimension_numbers=dn,
                                 precision=lax.Precision.HIGHEST)
    x = jax.nn.relu(x + params["b1"][None, None, None, :])
    x = lax.conv_general_dilated(x, params["w2"], (conv_stride,) * 2,
                                 [(conv_pad, conv_pad)] * 2, dimension_numbers=dn,
                                 precision=lax.Precision.HIGHEST)
    x = jax.nn.relu(x + params["b2"][None, None, None, :])
    return jnp.transpose(x, (0, 3, 1, 2))


if __name__ == "__main__":
    in_channels, out_channels = 4, 8
    kernel_size, padding, stride = 3, 1, 1

    key = jax.random.PRNGKey(0)
    kx, kp = jax.random.split(key)
    x = jax.random.normal(kx, (2, in_channels, 16, 16), jnp.float32)   # NCHW
    params = init_params(kp, in_channels, out_channels, kernel_size)

    ref = _reference(x, params, conv_stride=padding, conv_pad=stride)

    # Default fast path: bf16 MXU inputs, f32 accumulation (MXU fast path on v5e/v6e/v7x).
    out_bf16 = jax.block_until_ready(
        down_conv_forward(x, params, kernel_size, padding, stride))
    assert out_bf16.shape == (2, out_channels, 8, 8), out_bf16.shape
    err_bf16 = float(jnp.max(jnp.abs(out_bf16 - ref)))
    assert jnp.allclose(out_bf16, ref, atol=5e-2, rtol=5e-2), err_bf16

    # Exact path: f32 MXU inputs with precision=HIGHEST.
    out_f32 = jax.block_until_ready(
        down_conv_forward(x, params, kernel_size, padding, stride,
                          compute_dtype=jnp.float32))
    err_f32 = float(jnp.max(jnp.abs(out_f32 - ref)))
    assert jnp.allclose(out_f32, ref, atol=2e-4, rtol=2e-4), err_f32

    print("KERNEL_OK")
</pallas_src>

<mosaic_0001>
module attributes {stable_mosaic.version = 11 : i64} {
  func.func @kernel(%arg0: i32, %arg1: memref<16x128xf32, #tpu.memory_space<vmem>>, %arg2: memref<384x128xbf16, #tpu.memory_space<vmem>>, %arg3: memref<1x128xf32, #tpu.memory_space<vmem>>, %arg4: memref<384x128xbf16, #tpu.memory_space<vmem>>, %arg5: memref<1x128xf32, #tpu.memory_space<vmem>>, %arg6: memref<16x128xf32, #tpu.memory_space<vmem>>, %arg7: memref<19x128xbf16, #tpu.memory_space<vmem>>, %arg8: memref<19x128xbf16, #tpu.memory_space<vmem>>) attributes {dimension_semantics = [#tpu.dimension_semantics<parallel>], iteration_bounds = array<i64: 1>, scalar_prefetch = 0 : i64, scratch_operands = 2 : i64, tpu.core_type = #tpu.core_type<tc>, window_params = [{transform_indices = @transform_0, window_bounds = array<i64: 16, 128>}, {pipeline_mode = #tpu.pipeline_mode<synchronous>, transform_indices = @transform_1, window_bounds = array<i64: 384, 128>}, {pipeline_mode = #tpu.pipeline_mode<synchronous>, transform_indices = @transform_2, window_bounds = array<i64: 1, 128>}, {pipeline_mode = #tpu.pipeline_mode<synchronous>, transform_indices = @transform_3, window_bounds = array<i64: 384, 128>}, {pipeline_mode = #tpu.pipeline_mode<synchronous>, transform_indices = @transform_4, window_bounds = array<i64: 1, 128>}, {transform_indices = @transform_5, window_bounds = array<i64: 16, 128>}]} {
    %c0 = arith.constant 0 : index
    %c0_0 = arith.constant 0 : index
    %0 = vector.load %arg1[%c0, %c0_0] : memref<16x128xf32, #tpu.memory_space<vmem>>, vector<16x128xf32>
    %1 = vector.extract_strided_slice %0 {offsets = [0, 0], sizes = [16, 32], strides = [1, 1]} : vector<16x128xf32> to vector<16x32xf32>
    %2 = vector.extract_strided_slice %0 {offsets = [0, 32], sizes = [16, 32], strides = [1, 1]} : vector<16x128xf32> to vector<16x32xf32>
    %3 = arith.maximumf %1, %2 : vector<16x32xf32>
    %4 = vector.extract_strided_slice %0 {offsets = [0, 64], sizes = [16, 32], strides = [1, 1]} : vector<16x128xf32> to vector<16x32xf32>
    %5 = vector.extract_strided_slice %0 {offsets = [0, 96], sizes = [16, 32], strides = [1, 1]} : vector<16x128xf32> to vector<16x32xf32>
    %6 = arith.maximumf %4, %5 : vector<16x32xf32>
    %7 = arith.maximumf %3, %6 : vector<16x32xf32>
    %cst = arith.constant 0.000000e+00 : f32
    %8 = vector.broadcast %cst : f32 to vector<16x96xf32>
    %9 = tpu.concatenate %7, %8 in 1 : vector<16x32xf32>, vector<16x96xf32> -> vector<16x128xf32>
    %10 = arith.truncf %9 : vector<16x128xf32> to vector<16x128xbf16>
    %cst_1 = arith.constant 0.000000e+00 : bf16
    %11 = vector.broadcast %cst_1 : bf16 to vector<1x128xbf16>
    %c0_2 = arith.constant 0 : index
    %c0_3 = arith.constant 0 : index
    %12 = vector.load %arg7[%c0_2, %c0_3] : memref<19x128xbf16, #tpu.memory_space<vmem>>, vector<1x128xbf16>
    tpu.vector_store %arg7[%c0_2, %c0_3], %11 {strides = array<i32>} : memref<19x128xbf16, #tpu.memory_space<vmem>>, vector<1x128xbf16>,
    %c9 = arith.constant 9 : index
    %c0_4 = arith.constant 0 : index
    %13 = vector.load %arg7[%c9, %c0_4] : memref<19x128xbf16, #tpu.memory_space<vmem>>, vector<1x128xbf16>
    tpu.vector_store %arg7[%c9, %c0_4], %11 {strides = array<i32>} : memref<19x128xbf16, #tpu.memory_space<vmem>>, vector<1x128xbf16>,
    %c18 = arith.constant 18 : index
    %c0_5 = arith.constant 0 : index
    %14 = vector.load %arg7[%c18, %c0_5] : memref<19x128xbf16, #tpu.memory_space<vmem>>, vector<1x128xbf16>
    tpu.vector_store %arg7[%c18, %c0_5], %11 {strides = array<i32>} : memref<19x128xbf16, #tpu.memory_space<vmem>>, vector<1x128xbf16>,
    %15 = vector.extract_strided_slice %10 {offsets = [0, 0], sizes = [8, 128], strides = [1, 1]} : vector<16x128xbf16> to vector<8x128xbf16>
    %c1 = arith.constant 1 : index
    %c0_6 = arith.constant 0 : index
    %16 = vector.load %arg7[%c1, %c0_6] : memref<19x128xbf16, #tpu.memory_space<vmem>>, vector<8x128xbf16>
    tpu.vector_store %arg7[%c1, %c0_6], %15 {strides = array<i32>} : memref<19x128xbf16, #tpu.memory_space<vmem>>, vector<8x128xbf16>,
    %17 = vector.extract_strided_slice %10 {offsets = [8, 0], sizes = [8, 128], strides = [1, 1]} : vector<16x128xbf16> to vector<8x128xbf16>
    %c10 = arith.constant 10 : index
    %c0_7 = arith.constant 0 : index
    %18 = vector.load %arg7[%c10, %c0_7] : memref<19x128xbf16, #tpu.memory_space<vmem>>, vector<8x128xbf16>
    tpu.vector_store %arg7[%c10, %c0_7], %17 {strides = array<i32>} : memref<19x128xbf16, #tpu.memory_space<vmem>>, vector<8x128xbf16>,
    %c0_8 = arith.constant 0 : index
    %c0_9 = arith.constant 0 : index
    %19 = vector.load %arg7[%c0_8, %c0_9] : memref<19x128xbf16, #tpu.memory_space<vmem>>, vector<17x128xbf16>
    %c1_10 = arith.constant 1 : index
    %c0_11 = arith.constant 0 : index
    %20 = vector.load %arg7[%c1_10, %c0_11] : memref<19x128xbf16, #tpu.memory_space<vmem>>, vector<17x128xbf16>
    %c2 = arith.constant 2 : index
    %c0_12 = arith.constant 0 : index
    %21 = vector.load %arg7[%c2, %c0_12] : memref<19x128xbf16, #tpu.memory_space<vmem>>, vector<17x128xbf16>
    %22 = tpu.concatenate %19, %20, %21 in 1 : vector<17x128xbf16>, vector<17x128xbf16>, vector<17x128xbf16> -> vector<17x384xbf16>
    %c0_13 = arith.constant 0 : index
    %c0_14 = arith.constant 0 : index
    %23 = vector.load %arg2[%c0_13, %c0_14] : memref<384x128xbf16, #tpu.memory_space<vmem>>, vector<384x128xbf16>
    %cst_15 = arith.constant dense<0.000000e+00> : vector<17x128xf32>
    %24 = tpu.matmul %22, %23, %cst_15 {dimension_numbers = #tpu.dot_dimension_numbers<[1], [0], [0], [1], [0, 0, 1, 1], [], []>} : vector<17x384xbf16>, vector<384x128xbf16>, vector<17x128xf32> -> vector<17x128xf32>
    %c0_16 = arith.constant 0 : index
    %c0_17 = arith.constant 0 : index
    %25 = vector.load %arg3[%c0_16, %c0_17] : memref<1x128xf32, #tpu.memory_space<vmem>>, vector<1x128xf32>
    %26 = vector.broadcast %25 : vector<1x128xf32> to vector<17x128xf32>
    %27 = arith.addf %24, %26 : vector<17x128xf32>
    %cst_18 = arith.constant 0.000000e+00 : f32
    %28 = vector.broadcast %cst_18 : f32 to vector<17x128xf32>
    %29 = arith.maximumf %27, %28 : vector<17x128xf32>
    %30 = arith.truncf %29 : vector<17x128xf32> to vector<17x128xbf16>
    %cst_19 = arith.constant 0.000000e+00 : bf16
    %31 = vector.broadcast %cst_19 : bf16 to vector<1x128xbf16>
    %c0_20 = arith.constant 0 : index
    %c0_21 = arith.constant 0 : index
    %32 = vector.load %arg8[%c0_20, %c0_21] : memref<19x128xbf16, #tpu.memory_space<vmem>>, vector<1x128xbf16>
    tpu.vector_store %arg8[%c0_20, %c0_21], %31 {strides = array<i32>} : memref<19x128xbf16, #tpu.memory_space<vmem>>, vector<1x128xbf16>,
    %c9_22 = arith.constant 9 : index
    %c0_23 = arith.constant 0 : index
    %33 = vector.load %arg8[%c9_22, %c0_23] : memref<19x128xbf16, #tpu.memory_space<vmem>>, vector<1x128xbf16>
    tpu.vector_store %arg8[%c9_22, %c0_23], %31 {strides = array<i32>} : memref<19x128xbf16, #tpu.memory_space<vmem>>, vector<1x128xbf16>,
    %c18_24 = arith.constant 18 : index
    %c0_25 = arith.constant 0 : index
    %34 = vector.load %arg8[%c18_24, %c0_25] : memref<19x128xbf16, #tpu.memory_space<vmem>>, vector<1x128xbf16>
    tpu.vector_store %arg8[%c18_24, %c0_25], %31 {strides = array<i32>} : memref<19x128xbf16, #tpu.memory_space<vmem>>, vector<1x128xbf16>,
    %35 = vector.extract_strided_slice %30 {offsets = [0, 0], sizes = [8, 128], strides = [1, 1]} : vector<17x128xbf16> to vector<8x128xbf16>
    %c1_26 = arith.constant 1 : index
    %c0_27 = arith.constant 0 : index
    %36 = vector.load %arg8[%c1_26, %c0_27] : memref<19x128xbf16, #tpu.memory_space<vmem>>, vector<8x128xbf16>
    tpu.vector_store %arg8[%c1_26, %c0_27], %35 {strides = array<i32>} : memref<19x128xbf16, #tpu.memory_space<vmem>>, vector<8x128xbf16>,
    %37 = vector.extract_strided_slice %30 {offsets = [9, 0], sizes = [8, 128], strides = [1, 1]} : vector<17x128xbf16> to vector<8x128xbf16>
    %c10_28 = arith.constant 10 : index
    %c0_29 = arith.constant 0 : index
    %38 = vector.load %arg8[%c10_28, %c0_29] : memref<19x128xbf16, #tpu.memory_space<vmem>>, vector<8x128xbf16>
    tpu.vector_store %arg8[%c10_28, %c0_29], %37 {strides = array<i32>} : memref<19x128xbf16, #tpu.memory_space<vmem>>, vector<8x128xbf16>,
    %c0_30 = arith.constant 0 : index
    %c0_31 = arith.constant 0 : index
    %39 = vector.load %arg8[%c0_30, %c0_31] : memref<19x128xbf16, #tpu.memory_space<vmem>>, vector<17x128xbf16>
    %c1_32 = arith.constant 1 : index
    %c0_33 = arith.constant 0 : index
    %40 = vector.load %arg8[%c1_32, %c0_33] : memref<19x128xbf16, #tpu.memory_space<vmem>>, vector<17x128xbf16>
    %c2_34 = arith.constant 2 : index
    %c0_35 = arith.constant 0 : index
    %41 = vector.load %arg8[%c2_34, %c0_35] : memref<19x128xbf16, #tpu.memory_space<vmem>>, vector<17x128xbf16>
    %42 = tpu.concatenate %39, %40, %41 in 1 : vector<17x128xbf16>, vector<17x128xbf16>, vector<17x128xbf16> -> vector<17x384xbf16>
    %c0_36 = arith.constant 0 : index
    %c0_37 = arith.constant 0 : index
    %43 = vector.load %arg4[%c0_36, %c0_37] : memref<384x128xbf16, #tpu.memory_space<vmem>>, vector<384x128xbf16>
    %cst_38 = arith.constant dense<0.000000e+00> : vector<17x128xf32>
    %44 = tpu.matmul %42, %43, %cst_38 {dimension_numbers = #tpu.dot_dimension_numbers<[1], [0], [0], [1], [0, 0, 1, 1], [], []>} : vector<17x384xbf16>, vector<384x128xbf16>, vector<17x128xf32> -> vector<17x128xf32>
    %c0_39 = arith.constant 0 : index
    %c0_40 = arith.constant 0 : index
    %45 = vector.load %arg5[%c0_39, %c0_40] : memref<1x128xf32, #tpu.memory_space<vmem>>, vector<1x128xf32>
    %46 = vector.broadcast %45 : vector<1x128xf32> to vector<17x128xf32>
    %47 = arith.addf %44, %46 : vector<17x128xf32>
    %cst_41 = arith.constant 0.000000e+00 : f32
    %48 = vector.broadcast %cst_41 : f32 to vector<17x128xf32>
    %49 = arith.maximumf %47, %48 : vector<17x128xf32>
    %50 = vector.extract_strided_slice %49 {offsets = [0, 0], sizes = [8, 128], strides = [1, 1]} : vector<17x128xf32> to vector<8x128xf32>
    %c0_42 = arith.constant 0 : index
    %c0_43 = arith.constant 0 : index
    %51 = vector.load %arg6[%c0_42, %c0_43] : memref<16x128xf32, #tpu.memory_space<vmem>>, vector<8x128xf32>
    tpu.vector_store %arg6[%c0_42, %c0_43], %50 {strides = array<i32>} : memref<16x128xf32, #tpu.memory_space<vmem>>, vector<8x128xf32>,
    %52 = vector.extract_strided_slice %49 {offsets = [9, 0], sizes = [8, 128], strides = [1, 1]} : vector<17x128xf32> to vector<8x128xf32>
    %c8 = arith.constant 8 : index
    %c0_44 = arith.constant 0 : index
    %53 = vector.load %arg6[%c8, %c0_44] : memref<16x128xf32, #tpu.memory_space<vmem>>, vector<8x128xf32>
    tpu.vector_store %arg6[%c8, %c0_44], %52 {strides = array<i32>} : memref<16x128xf32, #tpu.memory_space<vmem>>, vector<8x128xf32>,
    return
  }
  func.func @transform_0(%arg0: i32) -> (i32, i32) {
    %c0_i32 = arith.constant 0 : i32
    %c0_i32_0 = arith.constant 0 : i32
    return %arg0, %c0_i32 : i32, i32
  }
  func.func @transform_1(%arg0: i32) -> (i32, i32) {
    %c0_i32 = arith.constant 0 : i32
    %c0_i32_0 = arith.constant 0 : i32
    %c0_i32_1 = arith.constant 0 : i32
    return %c0_i32, %c0_i32_0 : i32, i32
  }
  func.func @transform_2(%arg0: i32) -> (i32, i32) {
    %c0_i32 = arith.constant 0 : i32
    %c0_i32_0 = arith.constant 0 : i32
    %c0_i32_1 = arith.constant 0 : i32
    return %c0_i32, %c0_i32_0 : i32, i32
  }
  func.func @transform_3(%arg0: i32) -> (i32, i32) {
    %c0_i32 = arith.constant 0 : i32
    %c0_i32_0 = arith.constant 0 : i32
    %c0_i32_1 = arith.constant 0 : i32
    return %c0_i32, %c0_i32_0 : i32, i32
  }
  func.func @transform_4(%arg0: i32) -> (i32, i32) {
    %c0_i32 = arith.constant 0 : i32
    %c0_i32_0 = arith.constant 0 : i32
    %c0_i32_1 = arith.constant 0 : i32
    return %c0_i32, %c0_i32_0 : i32, i32
  }
  func.func @transform_5(%arg0: i32) -> (i32, i32) {
    %c0_i32 = arith.constant 0 : i32
    %c0_i32_0 = arith.constant 0 : i32
    return %arg0, %c0_i32 : i32, i32
  }
}

module attributes {stable_mosaic.version = 11 : i64} {
  func.func @kernel(%arg0: i32, %arg1: memref<16x128xf32, #tpu.memory_space<vmem>>, %arg2: memref<384x128xbf16, #tpu.memory_space<vmem>>, %arg3: memref<1x128xf32, #tpu.memory_space<vmem>>, %arg4: memref<384x128xbf16, #tpu.memory_space<vmem>>, %arg5: memref<1x128xf32, #tpu.memory_space<vmem>>, %arg6: memref<16x128xf32, #tpu.memory_space<vmem>>, %arg7: memref<19x128xbf16, #tpu.memory_space<vmem>>, %arg8: memref<19x128xbf16, #tpu.memory_space<vmem>>) attributes {dimension_semantics = [#tpu.dimension_semantics<parallel>], iteration_bounds = array<i64: 1>, scalar_prefetch = 0 : i64, scratch_operands = 2 : i64, tpu.core_type = #tpu.core_type<tc>, window_params = [{transform_indices = @transform_0, window_bounds = array<i64: 16, 128>}, {pipeline_mode = #tpu.pipeline_mode<synchronous>, transform_indices = @transform_1, window_bounds = array<i64: 384, 128>}, {pipeline_mode = #tpu.pipeline_mode<synchronous>, transform_indices = @transform_2, window_bounds = array<i64: 1, 128>}, {pipeline_mode = #tpu.pipeline_mode<synchronous>, transform_indices = @transform_3, window_bounds = array<i64: 384, 128>}, {pipeline_mode = #tpu.pipeline_mode<synchronous>, transform_indices = @transform_4, window_bounds = array<i64: 1, 128>}, {transform_indices = @transform_5, window_bounds = array<i64: 16, 128>}]} {
    %c0 = arith.constant 0 : index
    %c0_0 = arith.constant 0 : index
    %0 = vector.load %arg1[%c0, %c0_0] : memref<16x128xf32, #tpu.memory_space<vmem>>, vector<16x128xf32>
    %1 = vector.extract_strided_slice %0 {offsets = [0, 0], sizes = [16, 32], strides = [1, 1]} : vector<16x128xf32> to vector<16x32xf32>
    %2 = vector.extract_strided_slice %0 {offsets = [0, 32], sizes = [16, 32], strides = [1, 1]} : vector<16x128xf32> to vector<16x32xf32>
    %3 = arith.maximumf %1, %2 : vector<16x32xf32>
    %4 = vector.extract_strided_slice %0 {offsets = [0, 64], sizes = [16, 32], strides = [1, 1]} : vector<16x128xf32> to vector<16x32xf32>
    %5 = vector.extract_strided_slice %0 {offsets = [0, 96], sizes = [16, 32], strides = [1, 1]} : vector<16x128xf32> to vector<16x32xf32>
    %6 = arith.maximumf %4, %5 : vector<16x32xf32>
    %7 = arith.maximumf %3, %6 : vector<16x32xf32>
    %cst = arith.constant 0.000000e+00 : f32
    %8 = vector.broadcast %cst : f32 to vector<16x96xf32>
    %9 = tpu.concatenate %7, %8 in 1 : vector<16x32xf32>, vector<16x96xf32> -> vector<16x128xf32>
    %10 = arith.truncf %9 : vector<16x128xf32> to vector<16x128xbf16>
    %cst_1 = arith.constant 0.000000e+00 : bf16
    %11 = vector.broadcast %cst_1 : bf16 to vector<1x128xbf16>
    %c0_2 = arith.constant 0 : index
    %c0_3 = arith.constant 0 : index
    %12 = vector.load %arg7[%c0_2, %c0_3] : memref<19x128xbf16, #tpu.memory_space<vmem>>, vector<1x128xbf16>
    tpu.vector_store %arg7[%c0_2, %c0_3], %11 {strides = array<i32>} : memref<19x128xbf16, #tpu.memory_space<vmem>>, vector<1x128xbf16>,
    %c9 = arith.constant 9 : index
    %c0_4 = arith.constant 0 : index
    %13 = vector.load %arg7[%c9, %c0_4] : memref<19x128xbf16, #tpu.memory_space<vmem>>, vector<1x128xbf16>
    tpu.vector_store %arg7[%c9, %c0_4], %11 {strides = array<i32>} : memref<19x128xbf16, #tpu.memory_space<vmem>>, vector<1x128xbf16>,
    %c18 = arith.constant 18 : index
    %c0_5 = arith.constant 0 : index
    %14 = vector.load %arg7[%c18, %c0_5] : memref<19x128xbf16, #tpu.memory_space<vmem>>, vector<1x128xbf16>
    tpu.vector_store %arg7[%c18, %c0_5], %11 {strides = array<i32>} : memref<19x128xbf16, #tpu.memory_space<vmem>>, vector<1x128xbf16>,
    %15 = vector.extract_strided_slice %10 {offsets = [0, 0], sizes = [8, 128], strides = [1, 1]} : vector<16x128xbf16> to vector<8x128xbf16>
    %c1 = arith.constant 1 : index
    %c0_6 = arith.constant 0 : index
    %16 = vector.load %arg7[%c1, %c0_6] : memref<19x128xbf16, #tpu.memory_space<vmem>>, vector<8x128xbf16>
    tpu.vector_store %arg7[%c1, %c0_6], %15 {strides = array<i32>} : memref<19x128xbf16, #tpu.memory_space<vmem>>, vector<8x128xbf16>,
    %17 = vector.extract_strided_slice %10 {offsets = [8, 0], sizes = [8, 128], strides = [1, 1]} : vector<16x128xbf16> to vector<8x128xbf16>
    %c10 = arith.constant 10 : index
    %c0_7 = arith.constant 0 : index
    %18 = vector.load %arg7[%c10, %c0_7] : memref<19x128xbf16, #tpu.memory_space<vmem>>, vector<8x128xbf16>
    tpu.vector_store %arg7[%c10, %c0_7], %17 {strides = array<i32>} : memref<19x128xbf16, #tpu.memory_space<vmem>>, vector<8x128xbf16>,
    %c0_8 = arith.constant 0 : index
    %c0_9 = arith.constant 0 : index
    %19 = vector.load %arg7[%c0_8, %c0_9] : memref<19x128xbf16, #tpu.memory_space<vmem>>, vector<17x128xbf16>
    %c1_10 = arith.constant 1 : index
    %c0_11 = arith.constant 0 : index
    %20 = vector.load %arg7[%c1_10, %c0_11] : memref<19x128xbf16, #tpu.memory_space<vmem>>, vector<17x128xbf16>
    %c2 = arith.constant 2 : index
    %c0_12 = arith.constant 0 : index
    %21 = vector.load %arg7[%c2, %c0_12] : memref<19x128xbf16, #tpu.memory_space<vmem>>, vector<17x128xbf16>
    %22 = tpu.concatenate %19, %20, %21 in 1 : vector<17x128xbf16>, vector<17x128xbf16>, vector<17x128xbf16> -> vector<17x384xbf16>
    %c0_13 = arith.constant 0 : index
    %c0_14 = arith.constant 0 : index
    %23 = vector.load %arg2[%c0_13, %c0_14] : memref<384x128xbf16, #tpu.memory_space<vmem>>, vector<384x128xbf16>
    %cst_15 = arith.constant dense<0.000000e+00> : vector<17x128xf32>
    %24 = tpu.matmul %22, %23, %cst_15 {dimension_numbers = #tpu.dot_dimension_numbers<[1], [0], [0], [1], [0, 0, 1, 1], [], []>} : vector<17x384xbf16>, vector<384x128xbf16>, vector<17x128xf32> -> vector<17x128xf32>
    %c0_16 = arith.constant 0 : index
    %c0_17 = arith.constant 0 : index
    %25 = vector.load %arg3[%c0_16, %c0_17] : memref<1x128xf32, #tpu.memory_space<vmem>>, vector<1x128xf32>
    %26 = vector.broadcast %25 : vector<1x128xf32> to vector<17x128xf32>
    %27 = arith.addf %24, %26 : vector<17x128xf32>
    %cst_18 = arith.constant 0.000000e+00 : f32
    %28 = vector.broadcast %cst_18 : f32 to vector<17x128xf32>
    %29 = arith.maximumf %27, %28 : vector<17x128xf32>
    %30 = arith.truncf %29 : vector<17x128xf32> to vector<17x128xbf16>
    %cst_19 = arith.constant 0.000000e+00 : bf16
    %31 = vector.broadcast %cst_19 : bf16 to vector<1x128xbf16>
    %c0_20 = arith.constant 0 : index
    %c0_21 = arith.constant 0 : index
    %32 = vector.load %arg8[%c0_20, %c0_21] : memref<19x128xbf16, #tpu.memory_space<vmem>>, vector<1x128xbf16>
    tpu.vector_store %arg8[%c0_20, %c0_21], %31 {strides = array<i32>} : memref<19x128xbf16, #tpu.memory_space<vmem>>, vector<1x128xbf16>,
    %c9_22 = arith.constant 9 : index
    %c0_23 = arith.constant 0 : index
    %33 = vector.load %arg8[%c9_22, %c0_23] : memref<19x128xbf16, #tpu.memory_space<vmem>>, vector<1x128xbf16>
    tpu.vector_store %arg8[%c9_22, %c0_23], %31 {strides = array<i32>} : memref<19x128xbf16, #tpu.memory_space<vmem>>, vector<1x128xbf16>,
    %c18_24 = arith.constant 18 : index
    %c0_25 = arith.constant 0 : index
    %34 = vector.load %arg8[%c18_24, %c0_25] : memref<19x128xbf16, #tpu.memory_space<vmem>>, vector<1x128xbf16>
    tpu.vector_store %arg8[%c18_24, %c0_25], %31 {strides = array<i32>} : memref<19x128xbf16, #tpu.memory_space<vmem>>, vector<1x128xbf16>,
    %35 = vector.extract_strided_slice %30 {offsets = [0, 0], sizes = [8, 128], strides = [1, 1]} : vector<17x128xbf16> to vector<8x128xbf16>
    %c1_26 = arith.constant 1 : index
    %c0_27 = arith.constant 0 : index
    %36 = vector.load %arg8[%c1_26, %c0_27] : memref<19x128xbf16, #tpu.memory_space<vmem>>, vector<8x128xbf16>
    tpu.vector_store %arg8[%c1_26, %c0_27], %35 {strides = array<i32>} : memref<19x128xbf16, #tpu.memory_space<vmem>>, vector<8x128xbf16>,
    %37 = vector.extract_strided_slice %30 {offsets = [9, 0], sizes = [8, 128], strides = [1, 1]} : vector<17x128xbf16> to vector<8x128xbf16>
    %c10_28 = arith.constant 10 : index
    %c0_29 = arith.constant 0 : index
    %38 = vector.load %arg8[%c10_28, %c0_29] : memref<19x128xbf16, #tpu.memory_space<vmem>>, vector<8x128xbf16>
    tpu.vector_store %arg8[%c10_28, %c0_29], %37 {strides = array<i32>} : memref<19x128xbf16, #tpu.memory_space<vmem>>, vector<8x128xbf16>,
    %c0_30 = arith.constant 0 : index
    %c0_31 = arith.constant 0 : index
    %39 = vector.load %arg8[%c0_30, %c0_31] : memref<19x128xbf16, #tpu.memory_space<vmem>>, vector<17x128xbf16>
    %c1_32 = arith.constant 1 : index
    %c0_33 = arith.constant 0 : index
    %40 = vector.load %arg8[%c1_32, %c0_33] : memref<19x128xbf16, #tpu.memory_space<vmem>>, vector<17x128xbf16>
    %c2_34 = arith.constant 2 : index
    %c0_35 = arith.constant 0 : index
    %41 = vector.load %arg8[%c2_34, %c0_35] : memref<19x128xbf16, #tpu.memory_space<vmem>>, vector<17x128xbf16>
    %42 = tpu.concatenate %39, %40, %41 in 1 : vector<17x128xbf16>, vector<17x128xbf16>, vector<17x128xbf16> -> vector<17x384xbf16>
    %c0_36 = arith.constant 0 : index
    %c0_37 = arith.constant 0 : index
    %43 = vector.load %arg4[%c0_36, %c0_37] : memref<384x128xbf16, #tpu.memory_space<vmem>>, vector<384x128xbf16>
    %cst_38 = arith.constant dense<0.000000e+00> : vector<17x128xf32>
    %44 = tpu.matmul %42, %43, %cst_38 {dimension_numbers = #tpu.dot_dimension_numbers<[1], [0], [0], [1], [0, 0, 1, 1], [], []>} : vector<17x384xbf16>, vector<384x128xbf16>, vector<17x128xf32> -> vector<17x128xf32>
    %c0_39 = arith.constant 0 : index
    %c0_40 = arith.constant 0 : index
    %45 = vector.load %arg5[%c0_39, %c0_40] : memref<1x128xf32, #tpu.memory_space<vmem>>, vector<1x128xf32>
    %46 = vector.broadcast %45 : vector<1x128xf32> to vector<17x128xf32>
    %47 = arith.addf %44, %46 : vector<17x128xf32>
    %cst_41 = arith.constant 0.000000e+00 : f32
    %48 = vector.broadcast %cst_41 : f32 to vector<17x128xf32>
    %49 = arith.maximumf %47, %48 : vector<17x128xf32>
    %50 = vector.extract_strided_slice %49 {offsets = [0, 0], sizes = [8, 128], strides = [1, 1]} : vector<17x128xf32> to vector<8x128xf32>
    %c0_42 = arith.constant 0 : index
    %c0_43 = arith.constant 0 : index
    %51 = vector.load %arg6[%c0_42, %c0_43] : memref<16x128xf32, #tpu.memory_space<vmem>>, vector<8x128xf32>
    tpu.vector_store %arg6[%c0_42, %c0_43], %50 {strides = array<i32>} : memref<16x128xf32, #tpu.memory_space<vmem>>, vector<8x128xf32>,
    %52 = vector.extract_strided_slice %49 {offsets = [9, 0], sizes = [8, 128], strides = [1, 1]} : vector<17x128xf32> to vector<8x128xf32>
    %c8 = arith.constant 8 : index
    %c0_44 = arith.constant 0 : index
    %53 = vector.load %arg6[%c8, %c0_44] : memref<16x128xf32, #tpu.memory_space<vmem>>, vector<8x128xf32>
    tpu.vector_store %arg6[%c8, %c0_44], %52 {strides = array<i32>} : memref<16x128xf32, #tpu.memory_space<vmem>>, vector<8x128xf32>,
    return
  }
  func.func @transform_0(%arg0: i32) -> (i32, i32) {
    %c0_i32 = arith.constant 0 : i32
    %c0_i32_0 = arith.constant 0 : i32
    return %arg0, %c0_i32 : i32, i32
  }
  func.func @transform_1(%arg0: i32) -> (i32, i32) {
    %c0_i32 = arith.constant 0 : i32
    %c0_i32_0 = arith.constant 0 : i32
    %c0_i32_1 = arith.constant 0 : i32
    return %c0_i32, %c0_i32_0 : i32, i32
  }
  func.func @transform_2(%arg0: i32) -> (i32, i32) {
    %c0_i32 = arith.constant 0 : i32
    %c0_i32_0 = arith.constant 0 : i32
    %c0_i32_1 = arith.constant 0 : i32
    return %c0_i32, %c0_i32_0 : i32, i32
  }
  func.func @transform_3(%arg0: i32) -> (i32, i32) {
    %c0_i32 = arith.constant 0 : i32
    %c0_i32_0 = arith.constant 0 : i32
    %c0_i32_1 = arith.constant 0 : i32
    return %c0_i32, %c0_i32_0 : i32, i32
  }
  func.func @transform_4(%arg0: i32) -> (i32, i32) {
    %c0_i32 = arith.constant 0 : i32
    %c0_i32_0 = arith.constant 0 : i32
    %c0_i32_1 = arith.constant 0 : i32
    return %c0_i32, %c0_i32_0 : i32, i32
  }
  func.func @transform_5(%arg0: i32) -> (i32, i32) {
    %c0_i32 = arith.constant 0 : i32
    %c0_i32_0 = arith.constant 0 : i32
    return %arg0, %c0_i32 : i32, i32
  }
}

</mosaic_0001>

<bundles_post_ra>
// kernel: tpu_custom_call.1
= control target key start
LH: loop header
LB: loop body
LE: loop exit
PB: predicated region body
PF: predicated region fallthrough
CT: control target
= control target key end

     0   :  { %10 = vsyncpa [#allocation5], 0  ;;  %s1389_s0 = inlined_call_operand.hbm [shape: f32[16,128], index: 0, kind: input, shape index: {}]   ;;  %s1390_s1 = inlined_call_operand.hbm [shape: bf16[384,128], index: 1, kind: input, shape index: {}]   ;;  %s1391_s2 = inlined_call_operand.vmem [shape: f32[1,128], index: 2, kind: input, shape index: {}]   ;;  %s1392_s3 = inlined_call_operand.hbm [shape: bf16[384,128], index: 3, kind: input, shape index: {}]   ;;  %s1393_s4 = inlined_call_operand.vmem [shape: f32[1,128], index: 4, kind: input, shape index: {}]   ;;  %s1394_s5 = inlined_call_operand.hbm [shape: f32[16,128], index: 5, kind: output, shape index: {}]  }
   0x1   :  { %11 = vsyncpa [#allocation8], 0 }
   0x2   :  { %12 = vsyncpa [#allocation6], 0  ;;  %s1234_s18 = smov [#allocation7]   ;;  %s1140_s22 = scalar_lea.hbm %s1390_s1, 3072 }
   0x3   :  { %s30_s19 = sshll.u32 %s1234_s18, 4  ;;  %p1141_p0 = scmp.ne.s32.totalorder %s1390_s1, %s1140_s22  ;;  %s31_s19 = int_to_ptr.vmem [resolvable:$true] %s30_s19 }
   0x4   :  { %p1144_p1 = scmp.lt.u32.totalorder %s1140_s22, %s1390_s1 }
   0x6   :  { %p1146_p2 = pnand %p1144_p1, %p1141_p0 }
   0x8   :  { %1149 = shalt.err (!%p1146_p2)
}
   0x9   :  { %s1150_s27 = scalar_lea.vmem %s31_s19, 3072  ;;  %p1155_p4 = scmp.lt.s32.totalorder %s31_s19, %s31_s19 }
   0xa   :  { %p1151_p3 = scmp.ne.s32.totalorder %s31_s19, %s1150_s27  ;;  %p1156_p5 = scmp.lt.s32.totalorder %s1150_s27, %s1150_s27 }
   0xc   :  { %p1157_p6 = por %p1156_p5, %p1155_p4 }
   0xe   :  { %p1158_p7 = pnand %p1157_p6, %p1151_p3 }
  0x10   :  { %1161 = shalt.err (!%p1158_p7)
}
  0x11   :  { %s1235_s28 = smov 64   ;;  %s1236_s29 = smov 4  }
  0x12   :  { %36 = dma.hbm_to_vmem [thread:$0]  %s1390_s1, 3072, %s31_s19, [#allocation8], %s1235_s28, %s1235_s28, %s1236_s29  }
  0x13   :  { %s1237_s7 = smov [#allocation4]   ;;  %s1162_s11 = scalar_lea.hbm %s1389_s0, 256 }
  0x14   :  { %s18_s8 = sshll.u32 %s1237_s7, 4  ;;  %p1163_p8 = scmp.ne.s32.totalorder %s1389_s0, %s1162_s11  ;;  %s19_s8 = int_to_ptr.vmem [resolvable:$true] %s18_s8 }
  0x15   :  { %p1166_p9 = scmp.lt.u32.totalorder %s1162_s11, %s1389_s0 }
  0x17   :  { %p1168_p10 = pnand %p1166_p9, %p1163_p8 }
  0x19   :  { %1171 = shalt.err (!%p1168_p10)
}
  0x1a   :  { %s1172_s16 = scalar_lea.vmem %s19_s8, 256  ;;  %p1177_p12 = scmp.lt.s32.totalorder %s19_s8, %s19_s8 }
  0x1b   :  { %p1173_p11 = scmp.ne.s32.totalorder %s19_s8, %s1172_s16  ;;  %p1178_p13 = scmp.lt.s32.totalorder %s1172_s16, %s1172_s16 }
  0x1d   :  { %p1179_p0 = por %p1178_p13, %p1177_p12 }
  0x1f   :  { %p1180_p1 = pnand %p1179_p0, %p1173_p11 }
  0x21   :  { %1183 = shalt.err (!%p1180_p1)
}
  0x22   :  { %s1238_s1 = smov 128   ;;  %s1239_s17 = smov 8  }
  0x23   :  { %24 = dma.hbm_to_vmem [thread:$0]  %s1389_s0, 256, %s19_s8, [#allocation5], %s1238_s1, %s1238_s1, %s1239_s17  }
  0x24   :  { %s1240_s20 = smov [#allocation9]   ;;  %s1184_s24 = scalar_lea.hbm %s1392_s3, 3072 }
  0x25   :  { %s44_s21 = sshll.u32 %s1240_s20, 4  ;;  %p1185_p2 = scmp.ne.s32.totalorder %s1392_s3, %s1184_s24  ;;  %s45_s21 = int_to_ptr.vmem [resolvable:$true] %s44_s21 }
  0x26   :  { %p1188_p3 = scmp.lt.u32.totalorder %s1184_s24, %s1392_s3 }
  0x28   :  { %p1190_p4 = pnand %p1188_p3, %p1185_p2 }
  0x2a   :  { %1193 = shalt.err (!%p1190_p4)
}
  0x2b   :  { %s1194_s6 = scalar_lea.vmem %s45_s21, 3072  ;;  %p1199_p6 = scmp.lt.s32.totalorder %s45_s21, %s45_s21 }
  0x2c   :  { %p1195_p5 = scmp.ne.s32.totalorder %s45_s21, %s1194_s6  ;;  %p1200_p7 = scmp.lt.s32.totalorder %s1194_s6, %s1194_s6 }
  0x2e   :  { %p1201_p8 = por %p1200_p7, %p1199_p6 }
  0x30   :  { %p1202_p9 = pnand %p1201_p8, %p1195_p5 }
  0x32   :  { %1205 = shalt.err (!%p1202_p9)
}
  0x33   :  { %50 = dma.hbm_to_vmem [thread:$0]  %s1392_s3, 3072, %s45_s21, [#allocation8], %s1235_s28, %s1235_s28, %s1236_s29  }
  0x34   :  { %1228 = dma.done.wait [#allocation5], 256  }
  0x35   :  { %1229 = vsyncadd [#allocation5], 4294967040 }
  0x36   :  { %1230 = dma.done.wait [#allocation8], 6144  }
  0x37   :  { %1231 = vsyncadd [#allocation8], 4294961152  ;;  %vm89_vm0 = vcmask 1040384   ;;  %vm90_vm1 = vsmask.f32 256  ;;  %v63_v2 = vld [vmem:[#allocation4] sm:$0xff] }
  0x38   :  { %vm95_vm2 = vsmask.f32 7938  ;;  %vm1319_vm3 = vmand %vm89_vm0, %vm90_vm1  ;;  %v1328_v3 = vld [vmem:[#allocation4 + $0x8] sm:$0xff]  ;;  %s1241_s3 = smov 96   ;;  %v1084_v4 = vld [vmem:[#allocation7 + $0x80] sm:$0xff]   ;;  %vm100_vm5 = vcmask 1041409  }
  0x39   :  { %vm1324_vm4 = vmand %vm89_vm0, %vm95_vm2  ;;  %67 = vrot.lane.b32.xlu0 %v63_v2, %s1241_s3  ;;  %v1085_v5 = vld [vmem:[#allocation7 + $0x40] sm:$0xff]   ;;  %1035 = vmatprep.subr.bf16.mxu1 %v1084_v4  ;;  %v1087_v7 = vld [vmem:[#allocation7 + $0x88] sm:$0xff]   ;;  %vm101_vm6 = vsmask.f32 1280  ;;  %vm85_vm8 = vcmask 261120   ;;  %vm119_vm9 = vcmask 1043456  }
  0x3a   :  { %v1086_v6 = vld [vmem:[#allocation7] sm:$0xff]   ;;  %1036 = vmatpush3.bf16.msra.mxu1 %v1084_v4  ;;  %959 = vmatprep.subr.bf16.mxu0 %v1085_v5  ;;  %v92_v8 = vld [vmem:[#allocation2] sm:$0x1]  ;;  %v97_v10 = vld [vmem:[#allocation2 + $0x4] sm:$0x1]  ;;  %vm173_vm11 = vcmask 1046528  }
  0x3b   :  { %960 = vmatpush3.bf16.msra.mxu0 %v1086_v6  ;;  %v93_v9 = vsel %vm1319_vm3, 0, %v92_v8  ;;  %v479_v11 = vld [vmem:[#allocation3] sm:$0x1]  ;;  %1037 = vmatprep.subr.bf16.mxu1 %v1087_v7  ;;  %v98_v12 = vsel %vm1324_vm4, 0, %v97_v10  ;;  %v482_v14 = vld [vmem:[#allocation3 + $0x4] sm:$0x1]  ;;  %vm1339_vm7 = vmand %vm100_vm5, %vm101_vm6 }
  0x3c   :  { %94 = vst [vmem:[#allocation2] sm:$0x1] %v93_v9  ;;  %v480_v13 = vsel %vm1319_vm3, 0, %v479_v11  ;;  %99 = vst [vmem:[#allocation2 + $0x4] sm:$0x1] %v98_v12  ;;  %v483_v15 = vsel %vm1324_vm4, 0, %v482_v14 }
  0x3d   :  { %69 = vrot.lane.b32.xlu0 %v1328_v3, %s1241_s3  ;;  %481 = vst [vmem:[#allocation3] sm:$0x1] %v480_v13  ;;  %484 = vst [vmem:[#allocation3 + $0x4] sm:$0x1] %v483_v15  ;;  %v1088_v16 = vld [vmem:[#allocation7 + $0x48] sm:$0xff]   ;;  %v1090_v17 = vld [vmem:[#allocation7 + $0x90] sm:$0xff]  }
  0x3e   :  { %1038 = vmatpush3.bf16.msra.mxu1 %v1087_v7  ;;  %v1089_v18 = vld [vmem:[#allocation7 + $0x8] sm:$0xff]   ;;  %961 = vmatprep.subr.bf16.mxu0 %v1088_v16  ;;  %v1091_v19 = vld [vmem:[#allocation7 + $0x50] sm:$0xff]   ;;  %v1093_v20 = vld [vmem:[#allocation7 + $0x98] sm:$0xff]   ;;  %vm150_vm12 = vsmask.f32 7424 }
  0x3f   :  { %1039 = vmatprep.subr.bf16.mxu1 %v1090_v17  ;;  %962 = vmatpush3.bf16.msra.mxu0 %v1089_v18  ;;  %v1092_v21 = vld [vmem:[#allocation7 + $0x10] sm:$0xff]   ;;  %v1094_v22 = vld [vmem:[#allocation7 + $0x58] sm:$0xff]   ;;  %v1096_v23 = vld [vmem:[#allocation7 + $0xa0] sm:$0xff]   ;;  %vm512_vm13 = vsmask.f32 4368 }
  0x40   :  { %963 = vmatprep.subr.bf16.mxu0 %v1091_v19  ;;  %v1095_v24 = vld [vmem:[#allocation7 + $0x18] sm:$0xff]   ;;  %v103_v28 = vld [vmem:[#allocation2 + $0x8] sm:$0x2]  ;;  %v1099_v30 = vld [vmem:[#allocation7 + $0xa8] sm:$0xff]  }
  0x41   :  { %v1097_v29 = vld [vmem:[#allocation7 + $0x60] sm:$0xff]   ;;  %v104_v31 = vsel %vm1339_vm7, 0, %v103_v28  ;;  %v1100_v33 = vld [vmem:[#allocation7 + $0x68] sm:$0xff]   ;;  %v1102_v35 = vld [vmem:[#allocation7 + $0xb0] sm:$0xff]  }
  0x42   :  { %1040 = vmatpush3.bf16.msra.mxu1 %v1090_v17  ;;  %v1098_v32 = vld [vmem:[#allocation7 + $0x20] sm:$0xff]   ;;  %105 = vst [vmem:[#allocation2 + $0x8] sm:$0x2] %v104_v31  ;;  %v1101_v37 = vld [vmem:[#allocation7 + $0x28] sm:$0xff]   ;;  %v1103_v38 = vld [vmem:[#allocation7 + $0x70] sm:$0xff]  }
  0x43   :  { %1041 = vmatprep.subr.bf16.mxu1 %v1093_v20  ;;  %964 = vmatpush3.bf16.msra.mxu0 %v1092_v21  ;;  %v1105_v39 = vld [vmem:[#allocation7 + $0xb8] sm:$0xff]   ;;  %v1104_v40 = vld [vmem:[#allocation7 + $0x30] sm:$0xff]   ;;  %vm1349_vm10 = vmand %vm119_vm9, %vm95_vm2 }
  0x44   :  { %965 = vmatprep.subr.bf16.mxu0 %v1094_v22  ;;  %v1106_v41 = vld [vmem:[#allocation7 + $0x78] sm:$0xff]   ;;  %v1112_v18 = vld [vmem:[#allocation9 + $0x80] sm:$0xff]   ;;  %v1115_v21 = vld [vmem:[#allocation9 + $0x88] sm:$0xff]  }
  0x45   :  { %v1110_v42 = vld [vmem:[#allocation7 + $0x38] sm:$0xff]   ;;  %v1113_v19 = vld [vmem:[#allocation9 + $0x40] sm:$0xff]   ;;  %v1116_v22 = vld [vmem:[#allocation9 + $0x48] sm:$0xff]  }
  0x46   :  { %1042 = vmatpush3.bf16.msra.mxu1 %v1093_v20  ;;  %v121_v55 = vld [vmem:[#allocation2] sm:$0xf]  ;;  %v124_v56 = vld [vmem:[#allocation2 + $0x4] sm:$0x1]  ;;  %v1114_v20 = vld [vmem:[#allocation9] sm:$0xff]  }
  0x47   :  { %1043 = vmatprep.subr.bf16.mxu1 %v1096_v23  ;;  %966 = vmatpush3.bf16.msra.mxu0 %v1095_v24  ;;  %v1118_v24 = vld [vmem:[#allocation9 + $0x90] sm:$0xff]   ;;  %v1121_v28 = vld [vmem:[#allocation9 + $0x98] sm:$0xff]   ;;  %v1124_v31 = vld [vmem:[#allocation9 + $0xa0] sm:$0xff]  }
  0x48   :  { %967 = vmatprep.subr.bf16.mxu0 %v1097_v29  ;;  %v1122_v29 = vld [vmem:[#allocation9 + $0x58] sm:$0xff]   ;;  %vm513_vm14 = vmor %vm90_vm1, %vm512_vm13 }
  0x49   :  { %v1135_v27 = vld [vmem:[#allocation9 + $0x38] sm:$0xff]  }
  0x4a   :  { %1044 = vmatpush3.bf16.msra.mxu1 %v1096_v23  ;;  %v1117_v23 = vld [vmem:[#allocation9 + $0x8] sm:$0xff]  }
  0x4b   :  { %1045 = vmatprep.subr.bf16.mxu1 %v1099_v30  ;;  %968 = vmatpush3.bf16.msra.mxu0 %v1098_v32  ;;  %v1125_v32 = vld [vmem:[#allocation9 + $0x60] sm:$0xff]  }
  0x4c   :  { %969 = vmatprep.subr.bf16.mxu0 %v1100_v33  ;;  %v1126_v33 = vld [vmem:[#allocation9 + $0x20] sm:$0xff]  }
  0x4e   :  { %1046 = vmatpush3.bf16.msra.mxu1 %v1099_v30  ;;  %v1123_v30 = vld [vmem:[#allocation9 + $0x18] sm:$0xff]  }
  0x4f   :  { %1047 = vmatprep.subr.bf16.mxu1 %v1102_v35  ;;  %970 = vmatpush3.bf16.msra.mxu0 %v1101_v37  ;;  %v1128_v37 = vld [vmem:[#allocation9 + $0x68] sm:$0xff]  }
  0x50   :  { %971 = vmatprep.subr.bf16.mxu0 %v1103_v38  ;;  %v1129_v38 = vld [vmem:[#allocation9 + $0x28] sm:$0xff]  }
  0x52   :  { %1048 = vmatpush3.bf16.msra.mxu1 %v1102_v35  ;;  %v1127_v35 = vld [vmem:[#allocation9 + $0xa8] sm:$0xff]  }
  0x53   :  { %1049 = vmatprep.subr.bf16.mxu1 %v1105_v39  ;;  %972 = vmatpush3.bf16.msra.mxu0 %v1104_v40  ;;  %v1131_v40 = vld [vmem:[#allocation9 + $0x70] sm:$0xff]  }
  0x54   :  { %973 = vmatprep.subr.bf16.mxu0 %v1106_v41  ;;  %v1133_v41 = vld [vmem:[#allocation9 + $0xb8] sm:$0xff]  }
  0x56   :  { %1050 = vmatpush3.bf16.msra.mxu1 %v1105_v39  ;;  %v1130_v39 = vld [vmem:[#allocation9 + $0xb0] sm:$0xff]  }
  0x57   :  { %974 = vmatpush3.bf16.msra.mxu0 %v1110_v42  ;;  %1055 = vmatprep.subr.bf16.mxu1 %v1112_v18  ;;  %v1132_v42 = vld [vmem:[#allocation9 + $0x30] sm:$0xff]  }
  0x58   :  { %997 = vmatprep.subr.bf16.mxu0 %v1113_v19 }
  0xab   :  { %v68_v25 = vpop.permute.xlu0 %67 }
  0xac   :  { %v73_v26 = vmax.f32 %v63_v2, %v68_v25  ;;  %v1119_v25 = vld [vmem:[#allocation9 + $0x50] sm:$0xff]  }
  0xae   :  { %77 = vrot.lane.b32.xlu1 %v73_v26, %s1235_s28 }
  0xaf   :  { %v70_v34 = vpop.permute.xlu0 %69 }
  0xb0   :  { %v74_v36 = vmax.f32 %v1328_v3, %v70_v34  ;;  %v485_v34 = vld [vmem:[#allocation3 + $0x8] sm:$0x2] }
  0xb2   :  { %79 = vrot.lane.b32.xlu1 %v74_v36, %s1235_s28 }
 0x120   :  { %v78_v43 = vpop.permute.xlu1 %77 }
 0x121   :  { %v83_v44 = vmax.f32 %v73_v26, %v78_v43  ;;  %v1120_v26 = vld [vmem:[#allocation9 + $0x10] sm:$0xff]   ;;  %v1134_v43 = vld [vmem:[#allocation9 + $0x78] sm:$0xff]  }
 0x123   :  { %v86_v45 = vsel %vm85_vm8, %v83_v44, 0.0 }
 0x124   :  { %v954_v46 = vpack.c.bf16 %v86_v45, %v86_v45  ;;  %v80_v47 = vpop.permute.xlu1 %79 }
 0x125   :  { %v84_v48 = vmax.f32 %v74_v36, %v80_v47  ;;  %v486_v36 = vsel %vm1339_vm7, 0, %v485_v34 }
 0x126   :  { %v110_v49 = vshrl.u32 %v954_v46, 16  ;;  %v113_v52 = vshll.u32 %v954_v46, 16  ;;  %487 = vst [vmem:[#allocation3 + $0x8] sm:$0x2] %v486_v36 }
 0x127   :  { %v87_v50 = vsel %vm85_vm8, %v84_v48, 0.0 }
 0x128   :  { %v112_v51 = vrot.slane %v110_v49, 7  ;;  %v955_v53 = vpack.c.bf16 %v87_v50, %v87_v50  ;;  %v897_v49 = vld [vmem:[%s1391_s2] ss:$0 sm:$0xff] }
 0x12a   :  { %v115_v57 = vor.u32 %v113_v52, %v112_v51  ;;  %v116_v58 = vrot.slane %v112_v51, 4  ;;  %v129_v59 = vrot.slane %v955_v53, 7 }
 0x12c   :  { %v122_v60 = vsel %vm1349_vm10, %v115_v57, %v121_v55  ;;  %v125_v61 = vsel %vm1319_vm3, %v116_v58, %v124_v56  ;;  %v130_v62 = vrot.slane %v129_v59, 4  ;;  %133 = vst [vmem:[#allocation2 + $0x4] sm:$0xe] %v129_v59 }
 0x12d   :  { %123 = vst [vmem:[#allocation2] sm:$0xf] %v122_v60  ;;  %126 = vst [vmem:[#allocation2 + $0x4] sm:$0x1] %v125_v61 }
 0x12e   :  { %134 = vst [vmem:[#allocation2 + $0x8] sm:$0x1] %v130_v62 }
 0x134   :  { %v135_v63 = vld [vmem:[#allocation2] sm:$0xf]  ;;  %v136_v1 = vld [vmem:[#allocation2 + $0x4] sm:$0xf] }
 0x135   :  { %v138_v2 = vld [vmem:[#allocation2] sm:$0xe]  ;;  %v893_v3 = vcombine.low %v135_v63, %v136_v1  ;;  %v1109_v5 = vld [vmem:[#allocation2 + $0x8] ss:$0 sps:$4 sm:$0x33]  }
 0x136   :  { %v895_v4 = vcombine.low %v138_v2, %v136_v1  ;;  %v1111_v6 = vld [vmem:[#allocation2 + $0x8] ss:$0 sps:$4 sm:$0x11]   ;;  %v175_v8 = vrot.slane %v1109_v5, 1 }
 0x137   :  { %v154_v9 = vshll.u32 %v893_v3, 16  ;;  %v159_v10 = vshll.u32 %v1111_v6, 16  ;;  %v152_v12 = vshrl.u32 %v893_v3, 16  ;;  %v163_v17 = vshrl.u32 %v1111_v6, 16 }
 0x138   :  { %v174_v7 = vrot.slane %v895_v4, 1 }
 0x139   :  { %v156_v13 = vrot.slane %v154_v9, 1  ;;  %v161_v15 = vrot.slane %v159_v10, 1 }
 0x13a   :  { %v176_v11 = vsel %vm173_vm11, %v174_v7, %v175_v8 }
 0x13b   :  { %1051 = vmatprep.mubr.bf16.mxu1 %v176_v11  ;;  %v157_v14 = vor.u32 %v156_v13, %v152_v12  ;;  %v501_v12 = vld [vmem:[#allocation3] sm:$0xf]  ;;  %v504_v13 = vld [vmem:[#allocation3 + $0x4] sm:$0x1] }
 0x13c   :  { %1052 = vmatmul.mubr.bf16.vlgmr.msra.gmra.mrb[0].mxu1 %v175_v8 }
 0x13d   :  { %v162_v16 = vsel %vm150_vm12, %v157_v14, %v161_v15  ;;  %1056 = vmatpush3.bf16.msra.mxu1 %v1112_v18 }
 0x13e   :  { %410 = vmatprep.mubr.bf16.mxu0 %v162_v16  ;;  %1057 = vmatprep.subr.bf16.mxu1 %v1115_v21 }
 0x13f   :  { %411 = vmatmul.mubr.bf16.vlgmr.msra.gmra.mrb[0].mxu0 %v893_v3 }
 0x140   :  { %418 = vmatprep.mubr.bf16.mxu0 %v163_v17  ;;  %998 = vmatpush3.bf16.msra.mxu0 %v1114_v20 }
 0x141   :  { %1058 = vmatpush3.bf16.msra.mxu1 %v1115_v21  ;;  %999 = vmatprep.subr.bf16.mxu0 %v1116_v22 }
 0x142   :  { %1059 = vmatprep.subr.bf16.mxu1 %v1118_v24 }
 0x144   :  { %1000 = vmatpush3.bf16.msra.mxu0 %v1117_v23 }
 0x145   :  { %1060 = vmatpush3.bf16.msra.mxu1 %v1118_v24  ;;  %1001 = vmatprep.subr.bf16.mxu0 %v1119_v25 }
 0x146   :  { %1061 = vmatprep.subr.bf16.mxu1 %v1121_v28 }
 0x147   :  { %419 = vmatmul.mubr.bf16.gmra.mrb[4].mxu0 %v1111_v6 }
 0x148   :  { %1002 = vmatpush3.bf16.msra.mxu0 %v1120_v26 }
 0x149   :  { %1062 = vmatpush3.bf16.msra.mxu1 %v1121_v28  ;;  %1003 = vmatprep.subr.bf16.mxu0 %v1122_v29 }
 0x14a   :  { %1063 = vmatprep.subr.bf16.mxu1 %v1124_v31 }
 0x14c   :  { %1004 = vmatpush3.bf16.msra.mxu0 %v1123_v30 }
 0x14d   :  { %1064 = vmatpush3.bf16.msra.mxu1 %v1124_v31  ;;  %1005 = vmatprep.subr.bf16.mxu0 %v1125_v32 }
 0x14e   :  { %1065 = vmatprep.subr.bf16.mxu1 %v1127_v35 }
 0x150   :  { %1006 = vmatpush3.bf16.msra.mxu0 %v1126_v33 }
 0x151   :  { %1066 = vmatpush3.bf16.msra.mxu1 %v1127_v35  ;;  %1007 = vmatprep.subr.bf16.mxu0 %v1128_v37 }
 0x152   :  { %1067 = vmatprep.subr.bf16.mxu1 %v1130_v39 }
 0x154   :  { %1008 = vmatpush3.bf16.msra.mxu0 %v1129_v38 }
 0x155   :  { %1009 = vmatprep.subr.bf16.mxu0 %v1131_v40  ;;  %1068 = vmatpush3.bf16.msra.mxu1 %v1130_v39 }
 0x156   :  { %1069 = vmatprep.subr.bf16.mxu1 %v1133_v41 }
 0x158   :  { %1010 = vmatpush3.bf16.msra.mxu0 %v1132_v42 }
 0x159   :  { %1011 = vmatprep.subr.bf16.mxu0 %v1134_v43  ;;  %1070 = vmatpush3.bf16.msra.mxu1 %v1133_v41 }
 0x15c   :  { %1012 = vmatpush3.bf16.msra.mxu0 %v1135_v27 }
 0x20f   :  { %v1053_v44 = vpop.f32.mrb[0].mxu1 }
 0x210   :  { %v460_v45 = vpop.f32.mrb[1].mxu1 }
 0x211   :  { %v1054_v46 = vpop.f32.mrb[2].mxu1 }
 0x212   :  { %v463_v47 = vpop.f32.mrb[3].mxu1  ;;  %v975_v48 = vpop.f32.mrb[0].mxu0 }
 0x213   :  { %v976_v50 = vpop.f32.mrb[1].mxu0 }
 0x214   :  { %v977_v51 = vadd.f32 %v976_v50, %v975_v48  ;;  %v978_v52 = vpop.f32.mrb[2].mxu0 }
 0x215   :  { %v979_v53 = vpop.f32.mrb[3].mxu0 }
 0x216   :  { %v413_v55 = vadd.f32 %v977_v51, %v897_v49  ;;  %v980_v56 = vadd.f32 %v979_v53, %v978_v52 }
 0x218   :  { %v461_v57 = vadd.f32 %v460_v45, %v413_v55  ;;  %v416_v58 = vadd.f32 %v980_v56, %v897_v49 }
 0x21a   :  { %v474_v59 = vmax.f32 %v461_v57, 0.0  ;;  %v464_v60 = vadd.f32 %v463_v47, %v416_v58  ;;  %v981_v61 = vpop.f32.mrb[4].mxu0  ;;  %v929_v47 = vld [vmem:[%s1393_s4] ss:$0 sm:$0xff]  ;;  %s1242_s4 = smov [#allocation10]  }
 0x21b   :  { %v982_v62 = vpop.f32.mrb[5].mxu0  ;;  %s878_s9 = sshll.u32 %s1242_s4, 4  ;;  %s879_s9 = int_to_ptr.vmem [resolvable:$true] %s878_s9 }
 0x21c   :  { %v956_v63 = vpack.c.bf16 %v474_v59, %v474_v59  ;;  %v475_v1 = vmax.f32 %v464_v60, 0.0  ;;  %v983_v2 = vadd.f32 %v982_v62, %v981_v61  ;;  %v984_v3 = vpop.f32.mrb[6].mxu0  ;;  %s1206_s10 = scalar_lea.vmem %s879_s9, 256  ;;  %p1211_p11 = scmp.lt.s32.totalorder %s879_s9, %s879_s9 }
 0x21d   :  { %v985_v4 = vpop.f32.mrb[7].mxu0  ;;  %p1207_p10 = scmp.ne.s32.totalorder %s879_s9, %s1206_s10  ;;  %p1212_p12 = scmp.lt.s32.totalorder %s1206_s10, %s1206_s10 }
 0x21e   :  { %v492_v5 = vshrl.u32 %v956_v63, 16  ;;  %v957_v6 = vpack.c.bf16 %v475_v1, %v475_v1  ;;  %v421_v7 = vadd.f32 %v983_v2, %v897_v49  ;;  %v495_v9 = vshll.u32 %v956_v63, 16 }
 0x21f   :  { %p1213_p13 = por %p1212_p12, %p1211_p11 }
 0x220   :  { %v494_v8 = vrot.slane %v492_v5, 7  ;;  %v515_v10 = vshrl.u32 %v957_v6, 16  ;;  %v469_v11 = vadd.f32 %v1053_v44, %v421_v7  ;;  %v518_v14 = vshll.u32 %v957_v6, 16 }
 0x221   :  { %p1214_p0 = pnand %p1213_p13, %p1207_p10 }
 0x222   :  { %v497_v15 = vor.u32 %v495_v9, %v494_v8  ;;  %v498_v16 = vrot.slane %v494_v8, 4  ;;  %v517_v17 = vrot.slane %v515_v10, 7  ;;  %v476_v18 = vmax.f32 %v469_v11, 0.0 }
 0x224   :  { %v502_v19 = vsel %vm1349_vm10, %v497_v15, %v501_v12  ;;  %v505_v20 = vsel %vm1319_vm3, %v498_v16, %v504_v13  ;;  %v520_v21 = vor.u32 %v518_v14, %v517_v17  ;;  %v958_v22 = vpack.c.bf16 %v476_v18, %v476_v18 }
 0x225   :  { %503 = vst [vmem:[#allocation3] sm:$0xf] %v502_v19  ;;  %506 = vst [vmem:[#allocation3 + $0x4] sm:$0x1] %v505_v20  ;;  %v521_v23 = vrot.slane %v517_v17, 4 }
 0x226   :  { %528 = vst [vmem:[#allocation3 + $0x4] sm:$0xe] %v520_v21  ;;  %v523_v24 = vshll.u32 %v958_v22, 16 }
 0x228   :  { %v525_v25 = vsel %vm513_vm14, %v521_v23, %v523_v24 }
 0x229   :  { %529 = vst [vmem:[#allocation3 + $0x8] sm:$0x1] %v525_v25 }
 0x22c   :  { %v530_v26 = vld [vmem:[#allocation3] sm:$0xf] }
 0x22d   :  { %v533_v28 = vld [vmem:[#allocation3] sm:$0xe]  ;;  %v531_v29 = vld [vmem:[#allocation3 + $0x4] sm:$0xf] }
 0x22e   :  { %v925_v30 = vcombine.low %v530_v26, %v531_v29  ;;  %v927_v54 = vcombine.low %v533_v28, %v531_v29 }
 0x230   :  { %v548_v31 = vshll.u32 %v925_v30, 16  ;;  %v1138_v32 = vld [vmem:[#allocation3 + $0x8] ss:$0 sps:$4 sm:$0x33]   ;;  %v546_v0 = vshrl.u32 %v925_v30, 16  ;;  %v567_v35 = vrot.slane %v927_v54, 1 }
 0x231   :  { %v1139_v33 = vld [vmem:[#allocation3 + $0x8] ss:$0 sps:$4 sm:$0x11]   ;;  %v568_v36 = vrot.slane %v1138_v32, 1 }
 0x232   :  { %v550_v34 = vrot.slane %v548_v31, 1  ;;  %v553_v38 = vshll.u32 %v1139_v33, 16  ;;  %v557_v42 = vshrl.u32 %v1139_v33, 16 }
 0x233   :  { %v569_v39 = vsel %vm173_vm11, %v567_v35, %v568_v36 }
 0x234   :  { %v551_v37 = vor.u32 %v550_v34, %v546_v0  ;;  %1071 = vmatprep.mubr.bf16.mxu1 %v569_v39  ;;  %v555_v40 = vrot.slane %v553_v38, 1 }
 0x235   :  { %1072 = vmatmul.mubr.bf16.vlgmr.msra.gmra.mrb[4].mxu1 %v568_v36 }
 0x236   :  { %v556_v41 = vsel %vm150_vm12, %v551_v37, %v555_v40 }
 0x237   :  { %803 = vmatprep.mubr.bf16.mxu0 %v556_v41 }
 0x238   :  { %804 = vmatmul.mubr.bf16.vlgmr.msra.gmra.mrb[8].mxu0 %v925_v30 }
 0x239   :  { %811 = vmatprep.mubr.bf16.mxu0 %v557_v42 }
 0x240   :  { %812 = vmatmul.mubr.bf16.gmra.mrb[12].mxu0 %v1139_v33 }
 0x308   :  { %v1073_v43 = vpop.f32.mrb[4].mxu1 }
 0x309   :  { %v853_v27 = vpop.f32.mrb[5].mxu1 }
 0x30a   :  { %v1074_v44 = vpop.f32.mrb[6].mxu1 }
 0x30b   :  { %v1013_v45 = vpop.f32.mrb[8].mxu0  ;;  %v856_v46 = vpop.f32.mrb[7].mxu1 }
 0x30c   :  { %v1014_v48 = vpop.f32.mrb[9].mxu0 }
 0x30d   :  { %v1015_v49 = vadd.f32 %v1014_v48, %v1013_v45  ;;  %v1016_v50 = vpop.f32.mrb[10].mxu0 }
 0x30e   :  { %v1017_v51 = vpop.f32.mrb[11].mxu0 }
 0x30f   :  { %v806_v52 = vadd.f32 %v1015_v49, %v929_v47  ;;  %v1018_v53 = vadd.f32 %v1017_v51, %v1016_v50 }
 0x311   :  { %v854_v55 = vadd.f32 %v853_v27, %v806_v52  ;;  %v809_v56 = vadd.f32 %v1018_v53, %v929_v47 }
 0x313   :  { %v867_v57 = vmax.f32 %v854_v55, 0.0  ;;  %v857_v58 = vadd.f32 %v856_v46, %v809_v56  ;;  %v1019_v59 = vpop.f32.mrb[12].mxu0 }
 0x314   :  { %v1020_v60 = vpop.f32.mrb[13].mxu0 }
 0x315   :  { %870 = vst [vmem:[#allocation10] sm:$0xff] %v867_v57  ;;  %v868_v61 = vmax.f32 %v857_v58, 0.0  ;;  %v1021_v62 = vadd.f32 %v1020_v60, %v1019_v59  ;;  %v1022_v63 = vpop.f32.mrb[14].mxu0 }
 0x316   :  { %v1023_v1 = vpop.f32.mrb[15].mxu0 }
 0x317   :  { %871 = vst [vmem:[#allocation10 + $0x7] sm:$0xfe] %v868_v61  ;;  %v814_v2 = vadd.f32 %v1021_v62, %v929_v47 }
 0x319   :  { %v862_v3 = vadd.f32 %v1073_v43, %v814_v2 }
 0x31b   :  { %v869_v4 = vmax.f32 %v862_v3, 0.0 }
 0x31d   :  { %872 = vst [vmem:[#allocation10 + $0xf] sm:$0x1] %v869_v4 }
 0x31e   :  { %1217 = shalt.err (!%p1214_p0)
}
 0x31f   :  { %s1218_s13 = scalar_lea.hbm %s1394_s5, 256 }
 0x320   :  { %p1219_p1 = scmp.ne.s32.totalorder %s1394_s5, %s1218_s13  ;;  %p1222_p2 = scmp.lt.u32.totalorder %s1218_s13, %s1394_s5 }
 0x322   :  { %p1224_p3 = pnand %p1222_p2, %p1219_p1 }
 0x324   :  { %1227 = shalt.err (!%p1224_p3)
}
 0x325   :  { %884 = dma.vmem_to_hbm [thread:$0]  %s879_s9, 256, %s1394_s5, [#allocation6], %s1238_s1, %s1238_s1, %s1239_s17  }
 0x326   :  { %1232 = dma.done.wait [#allocation6], 256  }
 0x327   :  { %1233 = vsyncadd [#allocation6], 4294967040 }
 0x328   :  { %888 = vsyncpa [#allocation5], 1 }
 0x329   :  { %889 = vsyncpa [#allocation8], 1 }
 0x32a   :  { %890 = vsyncpa [#allocation6], 1 }

// kernel: tpu_custom_call.1
= control target key start
LH: loop header
LB: loop body
LE: loop exit
PB: predicated region body
PF: predicated region fallthrough
CT: control target
= control target key end

     0   :  { %10 = vsyncpa [#allocation5], 0  ;;  %s1389_s0 = inlined_call_operand.hbm [shape: f32[16,128], index: 0, kind: input, shape index: {}]   ;;  %s1390_s1 = inlined_call_operand.hbm [shape: bf16[384,128], index: 1, kind: input, shape index: {}]   ;;  %s1391_s2 = inlined_call_operand.vmem [shape: f32[1,128], index: 2, kind: input, shape index: {}]   ;;  %s1392_s3 = inlined_call_operand.hbm [shape: bf16[384,128], index: 3, kind: input, shape index: {}]   ;;  %s1393_s4 = inlined_call_operand.vmem [shape: f32[1,128], index: 4, kind: input, shape index: {}]   ;;  %s1394_s5 = inlined_call_operand.hbm [shape: f32[16,128], index: 5, kind: output, shape index: {}]  }
   0x1   :  { %11 = vsyncpa [#allocation8], 0 }
   0x2   :  { %12 = vsyncpa [#allocation6], 0  ;;  %s1234_s18 = smov [#allocation7]   ;;  %s1140_s22 = scalar_lea.hbm %s1390_s1, 3072 }
   0x3   :  { %s30_s19 = sshll.u32 %s1234_s18, 4  ;;  %p1141_p0 = scmp.ne.s32.totalorder %s1390_s1, %s1140_s22  ;;  %s31_s19 = int_to_ptr.vmem [resolvable:$true] %s30_s19 }
   0x4   :  { %p1144_p1 = scmp.lt.u32.totalorder %s1140_s22, %s1390_s1 }
   0x6   :  { %p1146_p2 = pnand %p1144_p1, %p1141_p0 }
   0x8   :  { %1149 = shalt.err (!%p1146_p2)
}
   0x9   :  { %s1150_s27 = scalar_lea.vmem %s31_s19, 3072  ;;  %p1155_p4 = scmp.lt.s32.totalorder %s31_s19, %s31_s19 }
   0xa   :  { %p1151_p3 = scmp.ne.s32.totalorder %s31_s19, %s1150_s27  ;;  %p1156_p5 = scmp.lt.s32.totalorder %s1150_s27, %s1150_s27 }
   0xc   :  { %p1157_p6 = por %p1156_p5, %p1155_p4 }
   0xe   :  { %p1158_p7 = pnand %p1157_p6, %p1151_p3 }
  0x10   :  { %1161 = shalt.err (!%p1158_p7)
}
  0x11   :  { %s1235_s28 = smov 64   ;;  %s1236_s29 = smov 4  }
  0x12   :  { %36 = dma.hbm_to_vmem [thread:$0]  %s1390_s1, 3072, %s31_s19, [#allocation8], %s1235_s28, %s1235_s28, %s1236_s29  }
  0x13   :  { %s1237_s7 = smov [#allocation4]   ;;  %s1162_s11 = scalar_lea.hbm %s1389_s0, 256 }
  0x14   :  { %s18_s8 = sshll.u32 %s1237_s7, 4  ;;  %p1163_p8 = scmp.ne.s32.totalorder %s1389_s0, %s1162_s11  ;;  %s19_s8 = int_to_ptr.vmem [resolvable:$true] %s18_s8 }
  0x15   :  { %p1166_p9 = scmp.lt.u32.totalorder %s1162_s11, %s1389_s0 }
  0x17   :  { %p1168_p10 = pnand %p1166_p9, %p1163_p8 }
  0x19   :  { %1171 = shalt.err (!%p1168_p10)
}
  0x1a   :  { %s1172_s16 = scalar_lea.vmem %s19_s8, 256  ;;  %p1177_p12 = scmp.lt.s32.totalorder %s19_s8, %s19_s8 }
  0x1b   :  { %p1173_p11 = scmp.ne.s32.totalorder %s19_s8, %s1172_s16  ;;  %p1178_p13 = scmp.lt.s32.totalorder %s1172_s16, %s1172_s16 }
  0x1d   :  { %p1179_p0 = por %p1178_p13, %p1177_p12 }
  0x1f   :  { %p1180_p1 = pnand %p1179_p0, %p1173_p11 }
  0x21   :  { %1183 = shalt.err (!%p1180_p1)
}
  0x22   :  { %s1238_s1 = smov 128   ;;  %s1239_s17 = smov 8  }
  0x23   :  { %24 = dma.hbm_to_vmem [thread:$0]  %s1389_s0, 256, %s19_s8, [#allocation5], %s1238_s1, %s1238_s1, %s1239_s17  }
  0x24   :  { %s1240_s20 = smov [#allocation9]   ;;  %s1184_s24 = scalar_lea.hbm %s1392_s3, 3072 }
  0x25   :  { %s44_s21 = sshll.u32 %s1240_s20, 4  ;;  %p1185_p2 = scmp.ne.s32.totalorder %s1392_s3, %s1184_s24  ;;  %s45_s21 = int_to_ptr.vmem [resolvable:$true] %s44_s21 }
  0x26   :  { %p1188_p3 = scmp.lt.u32.totalorder %s1184_s24, %s1392_s3 }
  0x28   :  { %p1190_p4 = pnand %p1188_p3, %p1185_p2 }
  0x2a   :  { %1193 = shalt.err (!%p1190_p4)
}
  0x2b   :  { %s1194_s6 = scalar_lea.vmem %s45_s21, 3072  ;;  %p1199_p6 = scmp.lt.s32.totalorder %s45_s21, %s45_s21 }
  0x2c   :  { %p1195_p5 = scmp.ne.s32.totalorder %s45_s21, %s1194_s6  ;;  %p1200_p7 = scmp.lt.s32.totalorder %s1194_s6, %s1194_s6 }
  0x2e   :  { %p1201_p8 = por %p1200_p7, %p1199_p6 }
  0x30   :  { %p1202_p9 = pnand %p1201_p8, %p1195_p5 }
  0x32   :  { %1205 = shalt.err (!%p1202_p9)
}
  0x33   :  { %50 = dma.hbm_to_vmem [thread:$0]  %s1392_s3, 3072, %s45_s21, [#allocation8], %s1235_s28, %s1235_s28, %s1236_s29  }
  0x34   :  { %1228 = dma.done.wait [#allocation5], 256  }
  0x35   :  { %1229 = vsyncadd [#allocation5], 4294967040 }
  0x36   :  { %1230 = dma.done.wait [#allocation8], 6144  }
  0x37   :  { %1231 = vsyncadd [#allocation8], 4294961152  ;;  %vm89_vm0 = vcmask 1040384   ;;  %vm90_vm1 = vsmask.f32 256  ;;  %v63_v2 = vld [vmem:[#allocation4] sm:$0xff] }
  0x38   :  { %vm95_vm2 = vsmask.f32 7938  ;;  %vm1319_vm3 = vmand %vm89_vm0, %vm90_vm1  ;;  %v1328_v3 = vld [vmem:[#allocation4 + $0x8] sm:$0xff]  ;;  %s1241_s3 = smov 96   ;;  %v1084_v4 = vld [vmem:[#allocation7 + $0x80] sm:$0xff]   ;;  %vm100_vm5 = vcmask 1041409  }
  0x39   :  { %vm1324_vm4 = vmand %vm89_vm0, %vm95_vm2  ;;  %67 = vrot.lane.b32.xlu0 %v63_v2, %s1241_s3  ;;  %v1085_v5 = vld [vmem:[#allocation7 + $0x40] sm:$0xff]   ;;  %1035 = vmatprep.subr.bf16.mxu1 %v1084_v4  ;;  %v1087_v7 = vld [vmem:[#allocation7 + $0x88] sm:$0xff]   ;;  %vm101_vm6 = vsmask.f32 1280  ;;  %vm85_vm8 = vcmask 261120   ;;  %vm119_vm9 = vcmask 1043456  }
  0x3a   :  { %v1086_v6 = vld [vmem:[#allocation7] sm:$0xff]   ;;  %1036 = vmatpush3.bf16.msra.mxu1 %v1084_v4  ;;  %959 = vmatprep.subr.bf16.mxu0 %v1085_v5  ;;  %v92_v8 = vld [vmem:[#allocation2] sm:$0x1]  ;;  %v97_v10 = vld [vmem:[#allocation2 + $0x4] sm:$0x1]  ;;  %vm173_vm11 = vcmask 1046528  }
  0x3b   :  { %960 = vmatpush3.bf16.msra.mxu0 %v1086_v6  ;;  %v93_v9 = vsel %vm1319_vm3, 0, %v92_v8  ;;  %v479_v11 = vld [vmem:[#allocation3] sm:$0x1]  ;;  %1037 = vmatprep.subr.bf16.mxu1 %v1087_v7  ;;  %v98_v12 = vsel %vm1324_vm4, 0, %v97_v10  ;;  %v482_v14 = vld [vmem:[#allocation3 + $0x4] sm:$0x1]  ;;  %vm1339_vm7 = vmand %vm100_vm5, %vm101_vm6 }
  0x3c   :  { %94 = vst [vmem:[#allocation2] sm:$0x1] %v93_v9  ;;  %v480_v13 = vsel %vm1319_vm3, 0, %v479_v11  ;;  %99 = vst [vmem:[#allocation2 + $0x4] sm:$0x1] %v98_v12  ;;  %v483_v15 = vsel %vm1324_vm4, 0, %v482_v14 }
  0x3d   :  { %69 = vrot.lane.b32.xlu0 %v1328_v3, %s1241_s3  ;;  %481 = vst [vmem:[#allocation3] sm:$0x1] %v480_v13  ;;  %484 = vst [vmem:[#allocation3 + $0x4] sm:$0x1] %v483_v15  ;;  %v1088_v16 = vld [vmem:[#allocation7 + $0x48] sm:$0xff]   ;;  %v1090_v17 = vld [vmem:[#allocation7 + $0x90] sm:$0xff]  }
  0x3e   :  { %1038 = vmatpush3.bf16.msra.mxu1 %v1087_v7  ;;  %v1089_v18 = vld [vmem:[#allocation7 + $0x8] sm:$0xff]   ;;  %961 = vmatprep.subr.bf16.mxu0 %v1088_v16  ;;  %v1091_v19 = vld [vmem:[#allocation7 + $0x50] sm:$0xff]   ;;  %v1093_v20 = vld [vmem:[#allocation7 + $0x98] sm:$0xff]   ;;  %vm150_vm12 = vsmask.f32 7424 }
  0x3f   :  { %1039 = vmatprep.subr.bf16.mxu1 %v1090_v17  ;;  %962 = vmatpush3.bf16.msra.mxu0 %v1089_v18  ;;  %v1092_v21 = vld [vmem:[#allocation7 + $0x10] sm:$0xff]   ;;  %v1094_v22 = vld [vmem:[#allocation7 + $0x58] sm:$0xff]   ;;  %v1096_v23 = vld [vmem:[#allocation7 + $0xa0] sm:$0xff]   ;;  %vm512_vm13 = vsmask.f32 4368 }
  0x40   :  { %963 = vmatprep.subr.bf16.mxu0 %v1091_v19  ;;  %v1095_v24 = vld [vmem:[#allocation7 + $0x18] sm:$0xff]   ;;  %v103_v28 = vld [vmem:[#allocation2 + $0x8] sm:$0x2]  ;;  %v1099_v30 = vld [vmem:[#allocation7 + $0xa8] sm:$0xff]  }
  0x41   :  { %v1097_v29 = vld [vmem:[#allocation7 + $0x60] sm:$0xff]   ;;  %v104_v31 = vsel %vm1339_vm7, 0, %v103_v28  ;;  %v1100_v33 = vld [vmem:[#allocation7 + $0x68] sm:$0xff]   ;;  %v1102_v35 = vld [vmem:[#allocation7 + $0xb0] sm:$0xff]  }
  0x42   :  { %1040 = vmatpush3.bf16.msra.mxu1 %v1090_v17  ;;  %v1098_v32 = vld [vmem:[#allocation7 + $0x20] sm:$0xff]   ;;  %105 = vst [vmem:[#allocation2 + $0x8] sm:$0x2] %v104_v31  ;;  %v1101_v37 = vld [vmem:[#allocation7 + $0x28] sm:$0xff]   ;;  %v1103_v38 = vld [vmem:[#allocation7 + $0x70] sm:$0xff]  }
  0x43   :  { %1041 = vmatprep.subr.bf16.mxu1 %v1093_v20  ;;  %964 = vmatpush3.bf16.msra.mxu0 %v1092_v21  ;;  %v1105_v39 = vld [vmem:[#allocation7 + $0xb8] sm:$0xff]   ;;  %v1104_v40 = vld [vmem:[#allocation7 + $0x30] sm:$0xff]   ;;  %vm1349_vm10 = vmand %vm119_vm9, %vm95_vm2 }
  0x44   :  { %965 = vmatprep.subr.bf16.mxu0 %v1094_v22  ;;  %v1106_v41 = vld [vmem:[#allocation7 + $0x78] sm:$0xff]   ;;  %v1112_v18 = vld [vmem:[#allocation9 + $0x80] sm:$0xff]   ;;  %v1115_v21 = vld [vmem:[#allocation9 + $0x88] sm:$0xff]  }
  0x45   :  { %v1110_v42 = vld [vmem:[#allocation7 + $0x38] sm:$0xff]   ;;  %v1113_v19 = vld [vmem:[#allocation9 + $0x40] sm:$0xff]   ;;  %v1116_v22 = vld [vmem:[#allocation9 + $0x48] sm:$0xff]  }
  0x46   :  { %1042 = vmatpush3.bf16.msra.mxu1 %v1093_v20  ;;  %v121_v55 = vld [vmem:[#allocation2] sm:$0xf]  ;;  %v124_v56 = vld [vmem:[#allocation2 + $0x4] sm:$0x1]  ;;  %v1114_v20 = vld [vmem:[#allocation9] sm:$0xff]  }
  0x47   :  { %1043 = vmatprep.subr.bf16.mxu1 %v1096_v23  ;;  %966 = vmatpush3.bf16.msra.mxu0 %v1095_v24  ;;  %v1118_v24 = vld [vmem:[#allocation9 + $0x90] sm:$0xff]   ;;  %v1121_v28 = vld [vmem:[#allocation9 + $0x98] sm:$0xff]   ;;  %v1124_v31 = vld [vmem:[#allocation9 + $0xa0] sm:$0xff]  }
  0x48   :  { %967 = vmatprep.subr.bf16.mxu0 %v1097_v29  ;;  %v1122_v29 = vld [vmem:[#allocation9 + $0x58] sm:$0xff]   ;;  %vm513_vm14 = vmor %vm90_vm1, %vm512_vm13 }
  0x49   :  { %v1135_v27 = vld [vmem:[#allocation9 + $0x38] sm:$0xff]  }
  0x4a   :  { %1044 = vmatpush3.bf16.msra.mxu1 %v1096_v23  ;;  %v1117_v23 = vld [vmem:[#allocation9 + $0x8] sm:$0xff]  }
  0x4b   :  { %1045 = vmatprep.subr.bf16.mxu1 %v1099_v30  ;;  %968 = vmatpush3.bf16.msra.mxu0 %v1098_v32  ;;  %v1125_v32 = vld [vmem:[#allocation9 + $0x60] sm:$0xff]  }
  0x4c   :  { %969 = vmatprep.subr.bf16.mxu0 %v1100_v33  ;;  %v1126_v33 = vld [vmem:[#allocation9 + $0x20] sm:$0xff]  }
  0x4e   :  { %1046 = vmatpush3.bf16.msra.mxu1 %v1099_v30  ;;  %v1123_v30 = vld [vmem:[#allocation9 + $0x18] sm:$0xff]  }
  0x4f   :  { %1047 = vmatprep.subr.bf16.mxu1 %v1102_v35  ;;  %970 = vmatpush3.bf16.msra.mxu0 %v1101_v37  ;;  %v1128_v37 = vld [vmem:[#allocation9 + $0x68] sm:$0xff]  }
  0x50   :  { %971 = vmatprep.subr.bf16.mxu0 %v1103_v38  ;;  %v1129_v38 = vld [vmem:[#allocation9 + $0x28] sm:$0xff]  }
  0x52   :  { %1048 = vmatpush3.bf16.msra.mxu1 %v1102_v35  ;;  %v1127_v35 = vld [vmem:[#allocation9 + $0xa8] sm:$0xff]  }
  0x53   :  { %1049 = vmatprep.subr.bf16.mxu1 %v1105_v39  ;;  %972 = vmatpush3.bf16.msra.mxu0 %v1104_v40  ;;  %v1131_v40 = vld [vmem:[#allocation9 + $0x70] sm:$0xff]  }
  0x54   :  { %973 = vmatprep.subr.bf16.mxu0 %v1106_v41  ;;  %v1133_v41 = vld [vmem:[#allocation9 + $0xb8] sm:$0xff]  }
  0x56   :  { %1050 = vmatpush3.bf16.msra.mxu1 %v1105_v39  ;;  %v1130_v39 = vld [vmem:[#allocation9 + $0xb0] sm:$0xff]  }
  0x57   :  { %974 = vmatpush3.bf16.msra.mxu0 %v1110_v42  ;;  %1055 = vmatprep.subr.bf16.mxu1 %v1112_v18  ;;  %v1132_v42 = vld [vmem:[#allocation9 + $0x30] sm:$0xff]  }
  0x58   :  { %997 = vmatprep.subr.bf16.mxu0 %v1113_v19 }
  0xab   :  { %v68_v25 = vpop.permute.xlu0 %67 }
  0xac   :  { %v73_v26 = vmax.f32 %v63_v2, %v68_v25  ;;  %v1119_v25 = vld [vmem:[#allocation9 + $0x50] sm:$0xff]  }
  0xae   :  { %77 = vrot.lane.b32.xlu1 %v73_v26, %s1235_s28 }
  0xaf   :  { %v70_v34 = vpop.permute.xlu0 %69 }
  0xb0   :  { %v74_v36 = vmax.f32 %v1328_v3, %v70_v34  ;;  %v485_v34 = vld [vmem:[#allocation3 + $0x8] sm:$0x2] }
  0xb2   :  { %79 = vrot.lane.b32.xlu1 %v74_v36, %s1235_s28 }
 0x120   :  { %v78_v43 = vpop.permute.xlu1 %77 }
 0x121   :  { %v83_v44 = vmax.f32 %v73_v26, %v78_v43  ;;  %v1120_v26 = vld [vmem:[#allocation9 + $0x10] sm:$0xff]   ;;  %v1134_v43 = vld [vmem:[#allocation9 + $0x78] sm:$0xff]  }
 0x123   :  { %v86_v45 = vsel %vm85_vm8, %v83_v44, 0.0 }
 0x124   :  { %v954_v46 = vpack.c.bf16 %v86_v45, %v86_v45  ;;  %v80_v47 = vpop.permute.xlu1 %79 }
 0x125   :  { %v84_v48 = vmax.f32 %v74_v36, %v80_v47  ;;  %v486_v36 = vsel %vm1339_vm7, 0, %v485_v34 }
 0x126   :  { %v110_v49 = vshrl.u32 %v954_v46, 16  ;;  %v113_v52 = vshll.u32 %v954_v46, 16  ;;  %487 = vst [vmem:[#allocation3 + $0x8] sm:$0x2] %v486_v36 }
 0x127   :  { %v87_v50 = vsel %vm85_vm8, %v84_v48, 0.0 }
 0x128   :  { %v112_v51 = vrot.slane %v110_v49, 7  ;;  %v955_v53 = vpack.c.bf16 %v87_v50, %v87_v50  ;;  %v897_v49 = vld [vmem:[%s1391_s2] ss:$0 sm:$0xff] }
 0x12a   :  { %v115_v57 = vor.u32 %v113_v52, %v112_v51  ;;  %v116_v58 = vrot.slane %v112_v51, 4  ;;  %v129_v59 = vrot.slane %v955_v53, 7 }
 0x12c   :  { %v122_v60 = vsel %vm1349_vm10, %v115_v57, %v121_v55  ;;  %v125_v61 = vsel %vm1319_vm3, %v116_v58, %v124_v56  ;;  %v130_v62 = vrot.slane %v129_v59, 4  ;;  %133 = vst [vmem:[#allocation2 + $0x4] sm:$0xe] %v129_v59 }
 0x12d   :  { %123 = vst [vmem:[#allocation2] sm:$0xf] %v122_v60  ;;  %126 = vst [vmem:[#allocation2 + $0x4] sm:$0x1] %v125_v61 }
 0x12e   :  { %134 = vst [vmem:[#allocation2 + $0x8] sm:$0x1] %v130_v62 }
 0x134   :  { %v135_v63 = vld [vmem:[#allocation2] sm:$0xf]  ;;  %v136_v1 = vld [vmem:[#allocation2 + $0x4] sm:$0xf] }
 0x135   :  { %v138_v2 = vld [vmem:[#allocation2] sm:$0xe]  ;;  %v893_v3 = vcombine.low %v135_v63, %v136_v1  ;;  %v1109_v5 = vld [vmem:[#allocation2 + $0x8] ss:$0 sps:$4 sm:$0x33]  }
 0x136   :  { %v895_v4 = vcombine.low %v138_v2, %v136_v1  ;;  %v1111_v6 = vld [vmem:[#allocation2 + $0x8] ss:$0 sps:$4 sm:$0x11]   ;;  %v175_v8 = vrot.slane %v1109_v5, 1 }
 0x137   :  { %v154_v9 = vshll.u32 %v893_v3, 16  ;;  %v159_v10 = vshll.u32 %v1111_v6, 16  ;;  %v152_v12 = vshrl.u32 %v893_v3, 16  ;;  %v163_v17 = vshrl.u32 %v1111_v6, 16 }
 0x138   :  { %v174_v7 = vrot.slane %v895_v4, 1 }
 0x139   :  { %v156_v13 = vrot.slane %v154_v9, 1  ;;  %v161_v15 = vrot.slane %v159_v10, 1 }
 0x13a   :  { %v176_v11 = vsel %vm173_vm11, %v174_v7, %v175_v8 }
 0x13b   :  { %1051 = vmatprep.mubr.bf16.mxu1 %v176_v11  ;;  %v157_v14 = vor.u32 %v156_v13, %v152_v12  ;;  %v501_v12 = vld [vmem:[#allocation3] sm:$0xf]  ;;  %v504_v13 = vld [vmem:[#allocation3 + $0x4] sm:$0x1] }
 0x13c   :  { %1052 = vmatmul.mubr.bf16.vlgmr.msra.gmra.mrb[0].mxu1 %v175_v8 }
 0x13d   :  { %v162_v16 = vsel %vm150_vm12, %v157_v14, %v161_v15  ;;  %1056 = vmatpush3.bf16.msra.mxu1 %v1112_v18 }
 0x13e   :  { %410 = vmatprep.mubr.bf16.mxu0 %v162_v16  ;;  %1057 = vmatprep.subr.bf16.mxu1 %v1115_v21 }
 0x13f   :  { %411 = vmatmul.mubr.bf16.vlgmr.msra.gmra.mrb[0].mxu0 %v893_v3 }
 0x140   :  { %418 = vmatprep.mubr.bf16.mxu0 %v163_v17  ;;  %998 = vmatpush3.bf16.msra.mxu0 %v1114_v20 }
 0x141   :  { %1058 = vmatpush3.bf16.msra.mxu1 %v1115_v21  ;;  %999 = vmatprep.subr.bf16.mxu0 %v1116_v22 }
 0x142   :  { %1059 = vmatprep.subr.bf16.mxu1 %v1118_v24 }
 0x144   :  { %1000 = vmatpush3.bf16.msra.mxu0 %v1117_v23 }
 0x145   :  { %1060 = vmatpush3.bf16.msra.mxu1 %v1118_v24  ;;  %1001 = vmatprep.subr.bf16.mxu0 %v1119_v25 }
 0x146   :  { %1061 = vmatprep.subr.bf16.mxu1 %v1121_v28 }
 0x147   :  { %419 = vmatmul.mubr.bf16.gmra.mrb[4].mxu0 %v1111_v6 }
 0x148   :  { %1002 = vmatpush3.bf16.msra.mxu0 %v1120_v26 }
 0x149   :  { %1062 = vmatpush3.bf16.msra.mxu1 %v1121_v28  ;;  %1003 = vmatprep.subr.bf16.mxu0 %v1122_v29 }
 0x14a   :  { %1063 = vmatprep.subr.bf16.mxu1 %v1124_v31 }
 0x14c   :  { %1004 = vmatpush3.bf16.msra.mxu0 %v1123_v30 }
 0x14d   :  { %1064 = vmatpush3.bf16.msra.mxu1 %v1124_v31  ;;  %1005 = vmatprep.subr.bf16.mxu0 %v1125_v32 }
 0x14e   :  { %1065 = vmatprep.subr.bf16.mxu1 %v1127_v35 }
 0x150   :  { %1006 = vmatpush3.bf16.msra.mxu0 %v1126_v33 }
 0x151   :  { %1066 = vmatpush3.bf16.msra.mxu1 %v1127_v35  ;;  %1007 = vmatprep.subr.bf16.mxu0 %v1128_v37 }
 0x152   :  { %1067 = vmatprep.subr.bf16.mxu1 %v1130_v39 }
 0x154   :  { %1008 = vmatpush3.bf16.msra.mxu0 %v1129_v38 }
 0x155   :  { %1009 = vmatprep.subr.bf16.mxu0 %v1131_v40  ;;  %1068 = vmatpush3.bf16.msra.mxu1 %v1130_v39 }
 0x156   :  { %1069 = vmatprep.subr.bf16.mxu1 %v1133_v41 }
 0x158   :  { %1010 = vmatpush3.bf16.msra.mxu0 %v1132_v42 }
 0x159   :  { %1011 = vmatprep.subr.bf16.mxu0 %v1134_v43  ;;  %1070 = vmatpush3.bf16.msra.mxu1 %v1133_v41 }
 0x15c   :  { %1012 = vmatpush3.bf16.msra.mxu0 %v1135_v27 }
 0x20f   :  { %v1053_v44 = vpop.f32.mrb[0].mxu1 }
 0x210   :  { %v460_v45 = vpop.f32.mrb[1].mxu1 }
 0x211   :  { %v1054_v46 = vpop.f32.mrb[2].mxu1 }
 0x212   :  { %v463_v47 = vpop.f32.mrb[3].mxu1  ;;  %v975_v48 = vpop.f32.mrb[0].mxu0 }
 0x213   :  { %v976_v50 = vpop.f32.mrb[1].mxu0 }
 0x214   :  { %v977_v51 = vadd.f32 %v976_v50, %v975_v48  ;;  %v978_v52 = vpop.f32.mrb[2].mxu0 }
 0x215   :  { %v979_v53 = vpop.f32.mrb[3].mxu0 }
 0x216   :  { %v413_v55 = vadd.f32 %v977_v51, %v897_v49  ;;  %v980_v56 = vadd.f32 %v979_v53, %v978_v52 }
 0x218   :  { %v461_v57 = vadd.f32 %v460_v45, %v413_v55  ;;  %v416_v58 = vadd.f32 %v980_v56, %v897_v49 }
 0x21a   :  { %v474_v59 = vmax.f32 %v461_v57, 0.0  ;;  %v464_v60 = vadd.f32 %v463_v47, %v416_v58  ;;  %v981_v61 = vpop.f32.mrb[4].mxu0  ;;  %v929_v47 = vld [vmem:[%s1393_s4] ss:$0 sm:$0xff]  ;;  %s1242_s4 = smov [#allocation10]  }
 0x21b   :  { %v982_v62 = vpop.f32.mrb[5].mxu0  ;;  %s878_s9 = sshll.u32 %s1242_s4, 4  ;;  %s879_s9 = int_to_ptr.vmem [resolvable:$true] %s878_s9 }
 0x21c   :  { %v956_v63 = vpack.c.bf16 %v474_v59, %v474_v59  ;;  %v475_v1 = vmax.f32 %v464_v60, 0.0  ;;  %v983_v2 = vadd.f32 %v982_v62, %v981_v61  ;;  %v984_v3 = vpop.f32.mrb[6].mxu0  ;;  %s1206_s10 = scalar_lea.vmem %s879_s9, 256  ;;  %p1211_p11 = scmp.lt.s32.totalorder %s879_s9, %s879_s9 }
 0x21d   :  { %v985_v4 = vpop.f32.mrb[7].mxu0  ;;  %p1207_p10 = scmp.ne.s32.totalorder %s879_s9, %s1206_s10  ;;  %p1212_p12 = scmp.lt.s32.totalorder %s1206_s10, %s1206_s10 }
 0x21e   :  { %v492_v5 = vshrl.u32 %v956_v63, 16  ;;  %v957_v6 = vpack.c.bf16 %v475_v1, %v475_v1  ;;  %v421_v7 = vadd.f32 %v983_v2, %v897_v49  ;;  %v495_v9 = vshll.u32 %v956_v63, 16 }
 0x21f   :  { %p1213_p13 = por %p1212_p12, %p1211_p11 }
 0x220   :  { %v494_v8 = vrot.slane %v492_v5, 7  ;;  %v515_v10 = vshrl.u32 %v957_v6, 16  ;;  %v469_v11 = vadd.f32 %v1053_v44, %v421_v7  ;;  %v518_v14 = vshll.u32 %v957_v6, 16 }
 0x221   :  { %p1214_p0 = pnand %p1213_p13, %p1207_p10 }
 0x222   :  { %v497_v15 = vor.u32 %v495_v9, %v494_v8  ;;  %v498_v16 = vrot.slane %v494_v8, 4  ;;  %v517_v17 = vrot.slane %v515_v10, 7  ;;  %v476_v18 = vmax.f32 %v469_v11, 0.0 }
 0x224   :  { %v502_v19 = vsel %vm1349_vm10, %v497_v15, %v501_v12  ;;  %v505_v20 = vsel %vm1319_vm3, %v498_v16, %v504_v13  ;;  %v520_v21 = vor.u32 %v518_v14, %v517_v17  ;;  %v958_v22 = vpack.c.bf16 %v476_v18, %v476_v18 }
 0x225   :  { %503 = vst [vmem:[#allocation3] sm:$0xf] %v502_v19  ;;  %506 = vst [vmem:[#allocation3 + $0x4] sm:$0x1] %v505_v20  ;;  %v521_v23 = vrot.slane %v517_v17, 4 }
 0x226   :  { %528 = vst [vmem:[#allocation3 + $0x4] sm:$0xe] %v520_v21  ;;  %v523_v24 = vshll.u32 %v958_v22, 16 }
 0x228   :  { %v525_v25 = vsel %vm513_vm14, %v521_v23, %v523_v24 }
 0x229   :  { %529 = vst [vmem:[#allocation3 + $0x8] sm:$0x1] %v525_v25 }
 0x22c   :  { %v530_v26 = vld [vmem:[#allocation3] sm:$0xf] }
 0x22d   :  { %v533_v28 = vld [vmem:[#allocation3] sm:$0xe]  ;;  %v531_v29 = vld [vmem:[#allocation3 + $0x4] sm:$0xf] }
 0x22e   :  { %v925_v30 = vcombine.low %v530_v26, %v531_v29  ;;  %v927_v54 = vcombine.low %v533_v28, %v531_v29 }
 0x230   :  { %v548_v31 = vshll.u32 %v925_v30, 16  ;;  %v1138_v32 = vld [vmem:[#allocation3 + $0x8] ss:$0 sps:$4 sm:$0x33]   ;;  %v546_v0 = vshrl.u32 %v925_v30, 16  ;;  %v567_v35 = vrot.slane %v927_v54, 1 }
 0x231   :  { %v1139_v33 = vld [vmem:[#allocation3 + $0x8] ss:$0 sps:$4 sm:$0x11]   ;;  %v568_v36 = vrot.slane %v1138_v32, 1 }
 0x232   :  { %v550_v34 = vrot.slane %v548_v31, 1  ;;  %v553_v38 = vshll.u32 %v1139_v33, 16  ;;  %v557_v42 = vshrl.u32 %v1139_v33, 16 }
 0x233   :  { %v569_v39 = vsel %vm173_vm11, %v567_v35, %v568_v36 }
 0x234   :  { %v551_v37 = vor.u32 %v550_v34, %v546_v0  ;;  %1071 = vmatprep.mubr.bf16.mxu1 %v569_v39  ;;  %v555_v40 = vrot.slane %v553_v38, 1 }
 0x235   :  { %1072 = vmatmul.mubr.bf16.vlgmr.msra.gmra.mrb[4].mxu1 %v568_v36 }
 0x236   :  { %v556_v41 = vsel %vm150_vm12, %v551_v37, %v555_v40 }
 0x237   :  { %803 = vmatprep.mubr.bf16.mxu0 %v556_v41 }
 0x238   :  { %804 = vmatmul.mubr.bf16.vlgmr.msra.gmra.mrb[8].mxu0 %v925_v30 }
 0x239   :  { %811 = vmatprep.mubr.bf16.mxu0 %v557_v42 }
 0x240   :  { %812 = vmatmul.mubr.bf16.gmra.mrb[12].mxu0 %v1139_v33 }
 0x308   :  { %v1073_v43 = vpop.f32.mrb[4].mxu1 }
 0x309   :  { %v853_v27 = vpop.f32.mrb[5].mxu1 }
 0x30a   :  { %v1074_v44 = vpop.f32.mrb[6].mxu1 }
 0x30b   :  { %v1013_v45 = vpop.f32.mrb[8].mxu0  ;;  %v856_v46 = vpop.f32.mrb[7].mxu1 }
 0x30c   :  { %v1014_v48 = vpop.f32.mrb[9].mxu0 }
 0x30d   :  { %v1015_v49 = vadd.f32 %v1014_v48, %v1013_v45  ;;  %v1016_v50 = vpop.f32.mrb[10].mxu0 }
 0x30e   :  { %v1017_v51 = vpop.f32.mrb[11].mxu0 }
 0x30f   :  { %v806_v52 = vadd.f32 %v1015_v49, %v929_v47  ;;  %v1018_v53 = vadd.f32 %v1017_v51, %v1016_v50 }
 0x311   :  { %v854_v55 = vadd.f32 %v853_v27, %v806_v52  ;;  %v809_v56 = vadd.f32 %v1018_v53, %v929_v47 }
 0x313   :  { %v867_v57 = vmax.f32 %v854_v55, 0.0  ;;  %v857_v58 = vadd.f32 %v856_v46, %v809_v56  ;;  %v1019_v59 = vpop.f32.mrb[12].mxu0 }
 0x314   :  { %v1020_v60 = vpop.f32.mrb[13].mxu0 }
 0x315   :  { %870 = vst [vmem:[#allocation10] sm:$0xff] %v867_v57  ;;  %v868_v61 = vmax.f32 %v857_v58, 0.0  ;;  %v1021_v62 = vadd.f32 %v1020_v60, %v1019_v59  ;;  %v1022_v63 = vpop.f32.mrb[14].mxu0 }
 0x316   :  { %v1023_v1 = vpop.f32.mrb[15].mxu0 }
 0x317   :  { %871 = vst [vmem:[#allocation10 + $0x7] sm:$0xfe] %v868_v61  ;;  %v814_v2 = vadd.f32 %v1021_v62, %v929_v47 }
 0x319   :  { %v862_v3 = vadd.f32 %v1073_v43, %v814_v2 }
 0x31b   :  { %v869_v4 = vmax.f32 %v862_v3, 0.0 }
 0x31d   :  { %872 = vst [vmem:[#allocation10 + $0xf] sm:$0x1] %v869_v4 }
 0x31e   :  { %1217 = shalt.err (!%p1214_p0)
}
 0x31f   :  { %s1218_s13 = scalar_lea.hbm %s1394_s5, 256 }
 0x320   :  { %p1219_p1 = scmp.ne.s32.totalorder %s1394_s5, %s1218_s13  ;;  %p1222_p2 = scmp.lt.u32.totalorder %s1218_s13, %s1394_s5 }
 0x322   :  { %p1224_p3 = pnand %p1222_p2, %p1219_p1 }
 0x324   :  { %1227 = shalt.err (!%p1224_p3)
}
 0x325   :  { %884 = dma.vmem_to_hbm [thread:$0]  %s879_s9, 256, %s1394_s5, [#allocation6], %s1238_s1, %s1238_s1, %s1239_s17  }
 0x326   :  { %1232 = dma.done.wait [#allocation6], 256  }
 0x327   :  { %1233 = vsyncadd [#allocation6], 4294967040 }
 0x328   :  { %888 = vsyncpa [#allocation5], 1 }
 0x329   :  { %889 = vsyncpa [#allocation8], 1 }
 0x32a   :  { %890 = vsyncpa [#allocation6], 1 }

</bundles_post_ra>
